<compile_context>
chip_gen: v7x
topology: tpu7x:2x2x1
jax: 0.10.0
libtpu: 0.0.40
codegen_flags: <defaults>
</compile_context>

<pallas_src>
import jax
import jax.numpy as jnp
from jax import lax
from jax.experimental import pallas as pl
from jax.experimental.pallas import tpu as pltpu


def make_bottleneck_kernel(W, P, rate, TH, compute_dtype):
    """Builds the Pallas kernel body for fixed static shapes."""
    E = TH + 2 * rate            # rows of the tile including the conv2 halo
    cdt = compute_dtype

    def kernel(xe_ref, w1_ref, b1_ref, w2_ref, b2_ref, w3_ref, b3_ref,
               out_ref, padw_ref):
        i = pl.program_id(1)
        n_tiles = pl.num_programs(1)

        # ---- conv1 (1x1, BN scale folded into w1) + bias + relu --------------
        # One matmul over the whole extended tile (main rows + halo rows).
        xe = xe_ref[0, 0]                                            # (E*W, Cin)
        h1 = jnp.dot(xe, w1_ref[...], preferred_element_type=jnp.float32)
        h1 = jnp.maximum(h1 + b1_ref[...], 0.0)                      # (E*W, P) f32

        # ---- stage h1 into the W-padded VMEM scratch --------------------------
        # Only the two thin W-border strips are zeroed each step (scratch is
        # uninitialised); the interior columns are fully overwritten.
        zcol = jnp.zeros((E, rate, P), cdt)
        padw_ref[:, :rate, :] = zcol
        padw_ref[:, rate + W:, :] = zcol
        padw_ref[:, rate:rate + W, :] = h1.reshape(E, W, P).astype(cdt)

        # Halo rows that lie outside the image are conv2's zero padding.  The x
        # values there are zero, but the folded BN bias is not, so overwrite
        # them with zeros on the boundary tiles only.
        zrow = jnp.zeros((rate, W, P), cdt)

        @pl.when(i == 0)
        def _():
            padw_ref[:rate, rate:rate + W, :] = zrow

        @pl.when(i == n_tiles - 1)
        def _():
            padw_ref[rate + TH:, rate:rate + W, :] = zrow

        # ---- conv2 (3x3, dilation=rate, BN scale folded) + bias + relu --------
        # For each kh, concatenate the 3 kw-shifted windows along the contraction
        # axis and contract with a (3P, P) weight slab: 3 matmuls with K = 3P
        # instead of nine tiny K = P matmuls.
        acc = None
        for kh in range(3):
            taps = jnp.concatenate(
                [padw_ref[kh * rate:kh * rate + TH, kw * rate:kw * rate + W, :]
                 for kw in range(3)],
                axis=-1)                                             # (TH, W, 3P)
            part = jnp.dot(taps.reshape(TH * W, 3 * P), w2_ref[kh],
                           preferred_element_type=jnp.float32)       # (TH*W, P)
            acc = part if acc is None else acc + part
        h2 = jnp.maximum(acc + b2_ref[...], 0.0)                     # (TH*W, P) f32

        # ---- conv3 (1x1, BN scale folded) + bias, identity residual, relu -----
        h3 = jnp.dot(h2.astype(cdt), w3_ref[...],
                     preferred_element_type=jnp.float32) + b3_ref[...]  # (TH*W, 4P)
        res = xe[rate * W:rate * W + TH * W, :].astype(jnp.float32)
        out_ref[0, 0] = jnp.maximum(h3 + res, 0.0).astype(out_ref.dtype)

    return kernel


def _fold_bn(gamma, beta, mean, var, eps=1e-5):
    scale = (gamma / jnp.sqrt(var + eps)).astype(jnp.float32)
    bias = (beta - mean * scale).astype(jnp.float32)
    return scale, bias


def _pick_row_tile(H, rate, target=8):
    hi = min(H, max(target, rate))
    for th in range(hi, 0, -1):
        if H % th == 0 and th >= rate:
            return th
    return H


def bottleneck_forward(x_nchw, params, rate=1, compute_dtype=jnp.float32, row_tile=8):
    """Bottleneck forward. x_nchw: (N, Cin, H, W), Cin == 4*planes, stride=1."""
    N, Cin, H, W = x_nchw.shape
    P = params["conv1_w"].shape[0]            # planes
    Cout = 4 * P
    assert Cin == Cout, "identity residual requires inplanes == planes * 4"
    assert 1 <= rate <= H
    # TODO(synk): downsample / stride>1 path not implemented (module uses downsample=None).

    TH = _pick_row_tile(H, rate, target=row_tile)
    nH = H // TH
    E = TH + 2 * rate
    Wp = W + 2 * rate
    cdt = compute_dtype

    # ---- fold eval-mode BN into weights / biases; pack to kernel layouts -----
    s1, b1 = _fold_bn(params["bn1_g"], params["bn1_b"], params["bn1_m"], params["bn1_v"])
    s2, b2 = _fold_bn(params["bn2_g"], params["bn2_b"], params["bn2_m"], params["bn2_v"])
    s3, b3 = _fold_bn(params["bn3_g"], params["bn3_b"], params["bn3_m"], params["bn3_v"])

    w1 = (jnp.transpose(params["conv1_w"][:, :, 0, 0], (1, 0)) * s1).astype(cdt)   # (Cin, P)
    w2 = jnp.transpose(params["conv2_w"], (2, 3, 1, 0)) * s2                       # (3,3,in,out)
    w2 = w2.reshape(3, 3 * P, P).astype(cdt)                                       # [kh, kw*P+cin, cout]
    w3 = (jnp.transpose(params["conv3_w"][:, :, 0, 0], (1, 0)) * s3).astype(cdt)   # (P, 4P)
    b1 = b1.reshape(1, P)
    b2 = b2.reshape(1, P)
    b3 = b3.reshape(1, Cout)

    # ---- activations: NCHW -> NHWC (cast fused), pad H, gather extended tiles -
    x_nhwc = jnp.transpose(x_nchw, (0, 2, 3, 1)).astype(cdt)          # (N, H, W, Cin)
    x_pad = jnp.pad(x_nhwc, ((0, 0), (rate, rate), (0, 0), (0, 0)))   # (N, H+2r, W, Cin)
    row_idx = (jnp.arange(nH) * TH)[:, None] + jnp.arange(E)[None, :]  # (nH, E)
    x_ext = x_pad[:, row_idx].reshape(N, nH, E * W, Cin)               # per-tile flat layout

    kernel = make_bottleneck_kernel(W, P, rate, TH, cdt)

    # ---- VMEM budget: set an explicit limit only when we exceed the default ---
    itemsize = jnp.dtype(cdt).itemsize
    est = 2 * (E * W * Cin * itemsize                   # x_ext block (double buffered)
               + TH * W * Cout * 4                      # out block (f32)
               + (Cin * P + 9 * P * P + P * Cout) * itemsize
               + (2 * P + Cout) * 4)                    # weights + biases
    est += E * Wp * P * itemsize                        # conv2 scratch
    est += (E * W * P + TH * W * 3 * P + 2 * TH * W * P + TH * W * Cout) * 4  # f32 temps
    vmem_limit = None
    if est > 30 * 1024 * 1024:
        vmem_limit = int(min(est * 3 // 2 + (4 << 20), 120 * 1024 * 1024))

    out_tiles = pl.pallas_call(
        kernel,
        out_shape=jax.ShapeDtypeStruct((N, nH, TH * W, Cout), jnp.float32),
        grid_spec=pltpu.PrefetchScalarGridSpec(
            num_scalar_prefetch=0,
            grid=(N, nH),
            in_specs=[
                pl.BlockSpec((1, 1, E * W, Cin), lambda n, i: (n, i, 0, 0)),   # extended x tile
                pl.BlockSpec((Cin, P), lambda n, i: (0, 0)),                   # w1 (scaled)
                pl.BlockSpec((1, P), lambda n, i: (0, 0)),                     # b1
                pl.BlockSpec((3, 3 * P, P), lambda n, i: (0, 0, 0)),           # w2 (scaled, packed)
                pl.BlockSpec((1, P), lambda n, i: (0, 0)),                     # b2
                pl.BlockSpec((P, Cout), lambda n, i: (0, 0)),                  # w3 (scaled)
                pl.BlockSpec((1, Cout), lambda n, i: (0, 0)),                  # b3
            ],
            out_specs=pl.BlockSpec((1, 1, TH * W, Cout), lambda n, i: (n, i, 0, 0)),
            scratch_shapes=[pltpu.VMEM((E, Wp, P), cdt)],                      # conv2 pad buf
        ),
        compiler_params=pltpu.CompilerParams(
            dimension_semantics=("parallel", "parallel"),
            vmem_limit_bytes=vmem_limit),
    )(x_ext, w1, b1, w2, b2, w3, b3)

    out = out_tiles.reshape(N, H, W, Cout)
    return jnp.transpose(out, (0, 3, 1, 2))                           # NHWC -> NCHW


# ---------------- pure-JAX reference (for correctness check) ----------------
def reference_forward(x_nchw, params, rate=1):
    eps = 1e-5
    x = jnp.transpose(x_nchw, (0, 2, 3, 1)).astype(jnp.float32)       # NHWC

    def bn(h, g, b, m, v):
        return (h - m) / jnp.sqrt(v + eps) * g + b

    w1 = jnp.transpose(params["conv1_w"][:, :, 0, 0], (1, 0))
    h = jnp.einsum("nhwc,cd->nhwd", x, w1)
    h = jax.nn.relu(bn(h, params["bn1_g"], params["bn1_b"], params["bn1_m"], params["bn1_v"]))

    w2 = jnp.transpose(params["conv2_w"], (2, 3, 1, 0))               # HWIO
    h = lax.conv_general_dilated(
        h, w2, window_strides=(1, 1), padding=[(rate, rate), (rate, rate)],
        rhs_dilation=(rate, rate), dimension_numbers=("NHWC", "HWIO", "NHWC"))
    h = jax.nn.relu(bn(h, params["bn2_g"], params["bn2_b"], params["bn2_m"], params["bn2_v"]))

    w3 = jnp.transpose(params["conv3_w"][:, :, 0, 0], (1, 0))
    h = jnp.einsum("nhwc,cd->nhwd", h, w3)
    h = bn(h, params["bn3_g"], params["bn3_b"], params["bn3_m"], params["bn3_v"])

    out = jax.nn.relu(h + x)
    return jnp.transpose(out, (0, 3, 1, 2))


if __name__ == "__main__":
    # Small shapes consistent with Bottleneck(inplanes=16, planes=4, stride=1, rate=2)
    N, planes, H, W = 2, 4, 16, 16
    inplanes = planes * 4        # identity residual path (downsample=None)
    rate = 2

    key = jax.random.PRNGKey(0)
    ks = jax.random.split(key, 16)

    params = {
        "conv1_w": 0.1 * jax.random.normal(ks[0], (planes, inplanes, 1, 1), jnp.float32),
        "conv2_w": 0.1 * jax.random.normal(ks[1], (planes, planes, 3, 3), jnp.float32),
        "conv3_w": 0.1 * jax.random.normal(ks[2], (planes * 4, planes, 1, 1), jnp.float32),
        "bn1_g": 1.0 + 0.1 * jax.random.normal(ks[3], (planes,), jnp.float32),
        "bn1_b": 0.1 * jax.random.normal(ks[4], (planes,), jnp.float32),
        "bn1_m": 0.1 * jax.random.normal(ks[5], (planes,), jnp.float32),
        "bn1_v": 0.5 + jnp.abs(jax.random.normal(ks[6], (planes,), jnp.float32)),
        "bn2_g": 1.0 + 0.1 * jax.random.normal(ks[7], (planes,), jnp.float32),
        "bn2_b": 0.1 * jax.random.normal(ks[8], (planes,), jnp.float32),
        "bn2_m": 0.1 * jax.random.normal(ks[9], (planes,), jnp.float32),
        "bn2_v": 0.5 + jnp.abs(jax.random.normal(ks[10], (planes,), jnp.float32)),
        "bn3_g": 1.0 + 0.1 * jax.random.normal(ks[11], (planes * 4,), jnp.float32),
        "bn3_b": 0.1 * jax.random.normal(ks[12], (planes * 4,), jnp.float32),
        "bn3_m": 0.1 * jax.random.normal(ks[13], (planes * 4,), jnp.float32),
        "bn3_v": 0.5 + jnp.abs(jax.random.normal(ks[14], (planes * 4,), jnp.float32)),
    }

    x = jax.random.normal(ks[15], (N, inplanes, H, W), jnp.float32)

    ref = reference_forward(x, params, rate=rate)

    # f32 path: tight numerical check.
    out_f32 = jax.block_until_ready(
        bottleneck_forward(x, params, rate=rate, compute_dtype=jnp.float32))
    assert out_f32.shape == (N, inplanes, H, W)
    err32 = float(jnp.max(jnp.abs(out_f32 - ref)))
    assert jnp.allclose(out_f32, ref, atol=2e-4, rtol=2e-4), err32

    # bf16 matmul-operand path (f32 accumulate / epilogue): looser check.
    out_bf16 = jax.block_until_ready(
        bottleneck_forward(x, params, rate=rate, compute_dtype=jnp.bfloat16))
    assert out_bf16.shape == (N, inplanes, H, W)
    errbf = float(jnp.max(jnp.abs(out_bf16 - ref)))
    assert jnp.allclose(out_bf16, ref, atol=8e-2, rtol=8e-2), errbf

    print("KERNEL_OK")
</pallas_src>

<mosaic_0001>
module attributes {stable_mosaic.version = 11 : i64} {
  func.func @kernel(%arg0: i32, %arg1: i32, %arg2: memref<1x1x192x16xf32, #tpu.memory_space<vmem>>, %arg3: memref<16x4xf32, #tpu.memory_space<vmem>>, %arg4: memref<1x4xf32, #tpu.memory_space<vmem>>, %arg5: memref<3x12x4xf32, #tpu.memory_space<vmem>>, %arg6: memref<1x4xf32, #tpu.memory_space<vmem>>, %arg7: memref<4x16xf32, #tpu.memory_space<vmem>>, %arg8: memref<1x16xf32, #tpu.memory_space<vmem>>, %arg9: memref<1x1x128x16xf32, #tpu.memory_space<vmem>>, %arg10: memref<12x20x4xf32, #tpu.memory_space<vmem>>) attributes {dimension_semantics = [#tpu.dimension_semantics<parallel>, #tpu.dimension_semantics<parallel>], iteration_bounds = array<i64: 2, 2>, scalar_prefetch = 0 : i64, scratch_operands = 1 : i64, tpu.core_type = #tpu.core_type<tc>, window_params = [{transform_indices = @transform_0, window_bounds = array<i64: 1, 1, 192, 16>}, {pipeline_mode = #tpu.pipeline_mode<synchronous>, transform_indices = @transform_1, window_bounds = array<i64: 16, 4>}, {pipeline_mode = #tpu.pipeline_mode<synchronous>, transform_indices = @transform_2, window_bounds = array<i64: 1, 4>}, {pipeline_mode = #tpu.pipeline_mode<synchronous>, transform_indices = @transform_3, window_bounds = array<i64: 3, 12, 4>}, {pipeline_mode = #tpu.pipeline_mode<synchronous>, transform_indices = @transform_4, window_bounds = array<i64: 1, 4>}, {pipeline_mode = #tpu.pipeline_mode<synchronous>, transform_indices = @transform_5, window_bounds = array<i64: 4, 16>}, {pipeline_mode = #tpu.pipeline_mode<synchronous>, transform_indices = @transform_6, window_bounds = array<i64: 1, 16>}, {transform_indices = @transform_7, window_bounds = array<i64: 1, 1, 128, 16>}]} {
    %c0 = arith.constant 0 : index
    %c0_0 = arith.constant 0 : index
    %c0_1 = arith.constant 0 : index
    %c0_2 = arith.constant 0 : index
    %0 = vector.load %arg2[%c0, %c0_0, %c0_1, %c0_2] : memref<1x1x192x16xf32, #tpu.memory_space<vmem>>, vector<1x1x192x16xf32>
    %1 = vector.shape_cast %0 : vector<1x1x192x16xf32> to vector<192x16xf32>
    %c0_3 = arith.constant 0 : index
    %c0_4 = arith.constant 0 : index
    %2 = vector.load %arg3[%c0_3, %c0_4] : memref<16x4xf32, #tpu.memory_space<vmem>>, vector<16x4xf32>
    %cst = arith.constant dense<0.000000e+00> : vector<192x4xf32>
    %3 = tpu.matmul %1, %2, %cst {dimension_numbers = #tpu.dot_dimension_numbers<[1], [0], [0], [1], [0, 0, 1, 1], [], []>} : vector<192x16xf32>, vector<16x4xf32>, vector<192x4xf32> -> vector<192x4xf32>
    %c0_5 = arith.constant 0 : index
    %c0_6 = arith.constant 0 : index
    %4 = vector.load %arg4[%c0_5, %c0_6] : memref<1x4xf32, #tpu.memory_space<vmem>>, vector<1x4xf32>
    %5 = vector.broadcast %4 : vector<1x4xf32> to vector<192x4xf32>
    %6 = arith.addf %3, %5 : vector<192x4xf32>
    %cst_7 = arith.constant 0.000000e+00 : f32
    %7 = vector.broadcast %cst_7 : f32 to vector<192x4xf32>
    %8 = arith.maximumf %6, %7 : vector<192x4xf32>
    %cst_8 = arith.constant 0.000000e+00 : f32
    %9 = vector.broadcast %cst_8 : f32 to vector<12x2x4xf32>
    %c0_9 = arith.constant 0 : index
    %c0_10 = arith.constant 0 : index
    %c0_11 = arith.constant 0 : index
    %10 = vector.load %arg10[%c0_9, %c0_10, %c0_11] : memref<12x20x4xf32, #tpu.memory_space<vmem>>, vector<12x2x4xf32>
    tpu.vector_store %arg10[%c0_9, %c0_10, %c0_11], %9 {strides = array<i32>} : memref<12x20x4xf32, #tpu.memory_space<vmem>>, vector<12x2x4xf32>,
    %c0_12 = arith.constant 0 : index
    %c18 = arith.constant 18 : index
    %c0_13 = arith.constant 0 : index
    %11 = vector.load %arg10[%c0_12, %c18, %c0_13] : memref<12x20x4xf32, #tpu.memory_space<vmem>>, vector<12x2x4xf32>
    tpu.vector_store %arg10[%c0_12, %c18, %c0_13], %9 {strides = array<i32>} : memref<12x20x4xf32, #tpu.memory_space<vmem>>, vector<12x2x4xf32>,
    %12 = vector.shape_cast %8 : vector<192x4xf32> to vector<12x16x4xf32>
    %c0_14 = arith.constant 0 : index
    %c2 = arith.constant 2 : index
    %c0_15 = arith.constant 0 : index
    %13 = vector.load %arg10[%c0_14, %c2, %c0_15] : memref<12x20x4xf32, #tpu.memory_space<vmem>>, vector<12x16x4xf32>
    tpu.vector_store %arg10[%c0_14, %c2, %c0_15], %12 {strides = array<i32>} : memref<12x20x4xf32, #tpu.memory_space<vmem>>, vector<12x16x4xf32>,
    %cst_16 = arith.constant 0.000000e+00 : f32
    %14 = vector.broadcast %cst_16 : f32 to vector<2x16x4xf32>
    %c0_i32 = arith.constant 0 : i32
    %15 = arith.cmpi eq, %arg1, %c0_i32 : i32
    %16 = arith.extui %15 : i1 to i32
    %c0_i32_17 = arith.constant 0 : i32
    %17 = arith.cmpi ne, %16, %c0_i32_17 : i32
    scf.if %17 {
      %c0_69 = arith.constant 0 : index
      %c2_70 = arith.constant 2 : index
      %c0_71 = arith.constant 0 : index
      %64 = vector.load %arg10[%c0_69, %c2_70, %c0_71] : memref<12x20x4xf32, #tpu.memory_space<vmem>>, vector<2x16x4xf32>
      tpu.vector_store %arg10[%c0_69, %c2_70, %c0_71], %14 {strides = array<i32>} : memref<12x20x4xf32, #tpu.memory_space<vmem>>, vector<2x16x4xf32>,
    } else {
    }
    %c1_i32 = arith.constant 1 : i32
    %18 = arith.cmpi eq, %arg1, %c1_i32 : i32
    %19 = arith.extui %18 : i1 to i32
    %c0_i32_18 = arith.constant 0 : i32
    %20 = arith.cmpi ne, %19, %c0_i32_18 : i32
    scf.if %20 {
      %c10 = arith.constant 10 : index
      %c2_69 = arith.constant 2 : index
      %c0_70 = arith.constant 0 : index
      %64 = vector.load %arg10[%c10, %c2_69, %c0_70] : memref<12x20x4xf32, #tpu.memory_space<vmem>>, vector<2x16x4xf32>
      tpu.vector_store %arg10[%c10, %c2_69, %c0_70], %14 {strides = array<i32>} : memref<12x20x4xf32, #tpu.memory_space<vmem>>, vector<2x16x4xf32>,
    } else {
    }
    %c0_19 = arith.constant 0 : index
    %c0_20 = arith.constant 0 : index
    %c0_21 = arith.constant 0 : index
    %21 = vector.load %arg10[%c0_19, %c0_20, %c0_21] : memref<12x20x4xf32, #tpu.memory_space<vmem>>, vector<8x16x4xf32>
    %c0_22 = arith.constant 0 : index
    %c2_23 = arith.constant 2 : index
    %c0_24 = arith.constant 0 : index
    %22 = vector.load %arg10[%c0_22, %c2_23, %c0_24] : memref<12x20x4xf32, #tpu.memory_space<vmem>>, vector<8x16x4xf32>
    %c0_25 = arith.constant 0 : index
    %c4 = arith.constant 4 : index
    %c0_26 = arith.constant 0 : index
    %23 = vector.load %arg10[%c0_25, %c4, %c0_26] : memref<12x20x4xf32, #tpu.memory_space<vmem>>, vector<8x16x4xf32>
    %24 = tpu.concatenate %21, %22, %23 in 2 : vector<8x16x4xf32>, vector<8x16x4xf32>, vector<8x16x4xf32> -> vector<8x16x12xf32>
    %25 = vector.shape_cast %24 : vector<8x16x12xf32> to vector<128x12xf32>
    %c0_27 = arith.constant 0 : index
    %c0_28 = arith.constant 0 : index
    %c0_29 = arith.constant 0 : index
    %26 = vector.load %arg5[%c0_27, %c0_28, %c0_29] : memref<3x12x4xf32, #tpu.memory_space<vmem>>, vector<1x12x4xf32>
    %27 = vector.shape_cast %26 : vector<1x12x4xf32> to vector<12x4xf32>
    %cst_30 = arith.constant dense<0.000000e+00> : vector<128x4xf32>
    %28 = tpu.matmul %25, %27, %cst_30 {dimension_numbers = #tpu.dot_dimension_numbers<[1], [0], [0], [1], [0, 0, 1, 1], [], []>} : vector<128x12xf32>, vector<12x4xf32>, vector<128x4xf32> -> vector<128x4xf32>
    %c2_31 = arith.constant 2 : index
    %c0_32 = arith.constant 0 : index
    %c0_33 = arith.constant 0 : index
    %29 = vector.load %arg10[%c2_31, %c0_32, %c0_33] : memref<12x20x4xf32, #tpu.memory_space<vmem>>, vector<8x16x4xf32>
    %c2_34 = arith.constant 2 : index
    %c2_35 = arith.constant 2 : index
    %c0_36 = arith.constant 0 : index
    %30 = vector.load %arg10[%c2_34, %c2_35, %c0_36] : memref<12x20x4xf32, #tpu.memory_space<vmem>>, vector<8x16x4xf32>
    %c2_37 = arith.constant 2 : index
    %c4_38 = arith.constant 4 : index
    %c0_39 = arith.constant 0 : index
    %31 = vector.load %arg10[%c2_37, %c4_38, %c0_39] : memref<12x20x4xf32, #tpu.memory_space<vmem>>, vector<8x16x4xf32>
    %32 = tpu.concatenate %29, %30, %31 in 2 : vector<8x16x4xf32>, vector<8x16x4xf32>, vector<8x16x4xf32> -> vector<8x16x12xf32>
    %33 = vector.shape_cast %32 : vector<8x16x12xf32> to vector<128x12xf32>
    %c1 = arith.constant 1 : index
    %c0_40 = arith.constant 0 : index
    %c0_41 = arith.constant 0 : index
    %34 = vector.load %arg5[%c1, %c0_40, %c0_41] : memref<3x12x4xf32, #tpu.memory_space<vmem>>, vector<1x12x4xf32>
    %35 = vector.shape_cast %34 : vector<1x12x4xf32> to vector<12x4xf32>
    %cst_42 = arith.constant dense<0.000000e+00> : vector<128x4xf32>
    %36 = tpu.matmul %33, %35, %cst_42 {dimension_numbers = #tpu.dot_dimension_numbers<[1], [0], [0], [1], [0, 0, 1, 1], [], []>} : vector<128x12xf32>, vector<12x4xf32>, vector<128x4xf32> -> vector<128x4xf32>
    %37 = arith.addf %28, %36 : vector<128x4xf32>
    %c4_43 = arith.constant 4 : index
    %c0_44 = arith.constant 0 : index
    %c0_45 = arith.constant 0 : index
    %38 = vector.load %arg10[%c4_43, %c0_44, %c0_45] : memref<12x20x4xf32, #tpu.memory_space<vmem>>, vector<8x16x4xf32>
    %c4_46 = arith.constant 4 : index
    %c2_47 = arith.constant 2 : index
    %c0_48 = arith.constant 0 : index
    %39 = vector.load %arg10[%c4_46, %c2_47, %c0_48] : memref<12x20x4xf32, #tpu.memory_space<vmem>>, vector<8x16x4xf32>
    %c4_49 = arith.constant 4 : index
    %c4_50 = arith.constant 4 : index
    %c0_51 = arith.constant 0 : index
    %40 = vector.load %arg10[%c4_49, %c4_50, %c0_51] : memref<12x20x4xf32, #tpu.memory_space<vmem>>, vector<8x16x4xf32>
    %41 = tpu.concatenate %38, %39, %40 in 2 : vector<8x16x4xf32>, vector<8x16x4xf32>, vector<8x16x4xf32> -> vector<8x16x12xf32>
    %42 = vector.shape_cast %41 : vector<8x16x12xf32> to vector<128x12xf32>
    %c2_52 = arith.constant 2 : index
    %c0_53 = arith.constant 0 : index
    %c0_54 = arith.constant 0 : index
    %43 = vector.load %arg5[%c2_52, %c0_53, %c0_54] : memref<3x12x4xf32, #tpu.memory_space<vmem>>, vector<1x12x4xf32>
    %44 = vector.shape_cast %43 : vector<1x12x4xf32> to vector<12x4xf32>
    %cst_55 = arith.constant dense<0.000000e+00> : vector<128x4xf32>
    %45 = tpu.matmul %42, %44, %cst_55 {dimension_numbers = #tpu.dot_dimension_numbers<[1], [0], [0], [1], [0, 0, 1, 1], [], []>} : vector<128x12xf32>, vector<12x4xf32>, vector<128x4xf32> -> vector<128x4xf32>
    %46 = arith.addf %37, %45 : vector<128x4xf32>
    %c0_56 = arith.constant 0 : index
    %c0_57 = arith.constant 0 : index
    %47 = vector.load %arg6[%c0_56, %c0_57] : memref<1x4xf32, #tpu.memory_space<vmem>>, vector<1x4xf32>
    %48 = vector.broadcast %47 : vector<1x4xf32> to vector<128x4xf32>
    %49 = arith.addf %46, %48 : vector<128x4xf32>
    %cst_58 = arith.constant 0.000000e+00 : f32
    %50 = vector.broadcast %cst_58 : f32 to vector<128x4xf32>
    %51 = arith.maximumf %49, %50 : vector<128x4xf32>
    %c0_59 = arith.constant 0 : index
    %c0_60 = arith.constant 0 : index
    %52 = vector.load %arg7[%c0_59, %c0_60] : memref<4x16xf32, #tpu.memory_space<vmem>>, vector<4x16xf32>
    %cst_61 = arith.constant dense<0.000000e+00> : vector<128x16xf32>
    %53 = tpu.matmul %51, %52, %cst_61 {dimension_numbers = #tpu.dot_dimension_numbers<[1], [0], [0], [1], [0, 0, 1, 1], [], []>} : vector<128x4xf32>, vector<4x16xf32>, vector<128x16xf32> -> vector<128x16xf32>
    %c0_62 = arith.constant 0 : index
    %c0_63 = arith.constant 0 : index
    %54 = vector.load %arg8[%c0_62, %c0_63] : memref<1x16xf32, #tpu.memory_space<vmem>>, vector<1x16xf32>
    %55 = vector.broadcast %54 : vector<1x16xf32> to vector<128x16xf32>
    %56 = arith.addf %53, %55 : vector<128x16xf32>
    %57 = vector.extract_strided_slice %1 {offsets = [32, 0], sizes = [128, 16], strides = [1, 1]} : vector<192x16xf32> to vector<128x16xf32>
    %58 = arith.addf %56, %57 : vector<128x16xf32>
    %cst_64 = arith.constant 0.000000e+00 : f32
    %59 = vector.broadcast %cst_64 : f32 to vector<128x16xf32>
    %60 = arith.maximumf %58, %59 : vector<128x16xf32>
    %c0_65 = arith.constant 0 : index
    %c0_66 = arith.constant 0 : index
    %c0_67 = arith.constant 0 : index
    %c0_68 = arith.constant 0 : index
    %61 = vector.load %arg9[%c0_65, %c0_66, %c0_67, %c0_68] : memref<1x1x128x16xf32, #tpu.memory_space<vmem>>, vector<1x1x128x16xf32>
    %62 = vector.shape_cast %61 : vector<1x1x128x16xf32> to vector<128x16xf32>
    %63 = vector.shape_cast %60 : vector<128x16xf32> to vector<1x1x128x16xf32>
    tpu.vector_store %arg9[%c0_65, %c0_66, %c0_67, %c0_68], %63 {strides = array<i32>} : memref<1x1x128x16xf32, #tpu.memory_space<vmem>>, vector<1x1x128x16xf32>,
    return
  }
  func.func @transform_0(%arg0: i32, %arg1: i32) -> (i32, i32, i32, i32) {
    %c0_i32 = arith.constant 0 : i32
    %c0_i32_0 = arith.constant 0 : i32
    %c0_i32_1 = arith.constant 0 : i32
    return %arg0, %arg1, %c0_i32, %c0_i32_0 : i32, i32, i32, i32
  }
  func.func @transform_1(%arg0: i32, %arg1: i32) -> (i32, i32) {
    %c0_i32 = arith.constant 0 : i32
    %c0_i32_0 = arith.constant 0 : i32
    %c0_i32_1 = arith.constant 0 : i32
    return %c0_i32, %c0_i32_0 : i32, i32
  }
  func.func @transform_2(%arg0: i32, %arg1: i32) -> (i32, i32) {
    %c0_i32 = arith.constant 0 : i32
    %c0_i32_0 = arith.constant 0 : i32
    %c0_i32_1 = arith.constant 0 : i32
    return %c0_i32, %c0_i32_0 : i32, i32
  }
  func.func @transform_3(%arg0: i32, %arg1: i32) -> (i32, i32, i32) {
    %c0_i32 = arith.constant 0 : i32
    %c0_i32_0 = arith.constant 0 : i32
    %c0_i32_1 = arith.constant 0 : i32
    %c0_i32_2 = arith.constant 0 : i32
    return %c0_i32, %c0_i32_0, %c0_i32_1 : i32, i32, i32
  }
  func.func @transform_4(%arg0: i32, %arg1: i32) -> (i32, i32) {
    %c0_i32 = arith.constant 0 : i32
    %c0_i32_0 = arith.constant 0 : i32
    %c0_i32_1 = arith.constant 0 : i32
    return %c0_i32, %c0_i32_0 : i32, i32
  }
  func.func @transform_5(%arg0: i32, %arg1: i32) -> (i32, i32) {
    %c0_i32 = arith.constant 0 : i32
    %c0_i32_0 = arith.constant 0 : i32
    %c0_i32_1 = arith.constant 0 : i32
    return %c0_i32, %c0_i32_0 : i32, i32
  }
  func.func @transform_6(%arg0: i32, %arg1: i32) -> (i32, i32) {
    %c0_i32 = arith.constant 0 : i32
    %c0_i32_0 = arith.constant 0 : i32
    %c0_i32_1 = arith.constant 0 : i32
    return %c0_i32, %c0_i32_0 : i32, i32
  }
  func.func @transform_7(%arg0: i32, %arg1: i32) -> (i32, i32, i32, i32) {
    %c0_i32 = arith.constant 0 : i32
    %c0_i32_0 = arith.constant 0 : i32
    %c0_i32_1 = arith.constant 0 : i32
    return %arg0, %arg1, %c0_i32, %c0_i32_0 : i32, i32, i32, i32
  }
}

</mosaic_0001>

<bundles_post_ra>
// kernel: tpu_custom_call.1
= control target key start
LH: loop header
LB: loop body
LE: loop exit
PB: predicated region body
PF: predicated region fallthrough
CT: control target
= control target key end

     0   :  { %s2873_s24 = smov 0   ;;  %s2875_s25 = smov 0   ;;  %s3715_s0 = inlined_call_operand.vmem [shape: f32[2,2,192,16], index: 0, kind: input, shape index: {}]   ;;  %s3716_s1 = inlined_call_operand.vmem [shape: f32[16,4], index: 1, kind: input, shape index: {}]   ;;  %s3717_s2 = inlined_call_operand.vmem [shape: f32[1,4], index: 2, kind: input, shape index: {}]   ;;  %s3718_s3 = inlined_call_operand.vmem [shape: f32[3,12,4], index: 3, kind: input, shape index: {}]   ;;  %s3719_s4 = inlined_call_operand.vmem [shape: f32[1,4], index: 4, kind: input, shape index: {}]   ;;  %s3720_s5 = inlined_call_operand.vmem [shape: f32[4,16], index: 5, kind: input, shape index: {}]   ;;  %s3721_s6 = inlined_call_operand.vmem [shape: f32[1,16], index: 6, kind: input, shape index: {}]   ;;  %s3722_s7 = inlined_call_operand.vmem [shape: f32[2,2,128,16], index: 7, kind: output, shape index: {}]  }
   0x1   :  { %s2877_s26 = smov 0   ;;  %s2879_s27 = smov 0  }
   0x2   :  { %s2881_s28 = smov 0  }
   0x3 LB: > { %s26_s29 = sadd.s32 1, %s2817_s26  ;;  %s29_s30 = sadd.s32 1, %s2821_s27  ;;  %s2825_s28 = sphi %s2881_s28, %s17_s28   ;;  %s2821_s27 = sphi %s2879_s27, %s3728_s27   ;;  %s2817_s26 = sphi %s2877_s26, %s3727_s26   ;;  %s2813_s25 = sphi %s2875_s25, %s3726_s25   ;;  %s2809_s24 = sphi %s2873_s24, %s3725_s24  }
   0x4   : > { %p27_p0 = scmp.ge.s32.totalorder %s26_s29, 2  ;;  %p2328_p1 = scmp.ge.s32.totalorder %s2825_s28, 1 }
   0x5   : > { %p257_p2 = scmp.lt.s32.totalorder %s2825_s28, 5 }
   0x6   : > { %s3730_s29 = smov (%p27_p0, %s26_s29), 0  ;;  %s3732_s30 = smov (!%p27_p0, %s29_s30), %s2821_s27 }
   0x7   : > { %p258_p3 = pnand %p2328_p1, %p257_p2  ;;  %p31_p4 = scmp.ge.s32.totalorder %s3732_s30, 2 }
   0x8   : > { %v339_v0 = vld [vmem:[%s3716_s1] sm:$0xff] (!%p258_p3)  ;;  %v340_v1 = vld [vmem:[%s3716_s1 + $0x8] sm:$0xff] (!%p258_p3)  ;;  %p297_p5 = scmp.lt.s32.totalorder (!%p258_p3), %s2813_s25, 1  ;;  %p299_p6 = scmp.lt.s32.totalorder (!%p258_p3), %s2809_s24, 1  ;;  %vm348_vm0 = vcmask (!%p258_p3), 130048   ;;  %vm630_vm1 = vcmask (!%p258_p3), 25600  }
   0x9   : > { %s3734_s30 = smov (%p31_p4, %s3732_s30), 0  ;;  %261 = sbr.rel (%p258_p3) target bundleno = 1042 (0x412), region = 48 }
   0xa   : > { %v2683_v2 = vpack.c.bf16 (!%p258_p3), %v340_v1, %v339_v0  ;;  %v2827_v27 = vmov (!%p258_p3), 0.0   ;;  %v3046_v28 = vld [vmem:[%s3717_s2] ss:$0 sm:$0xff] (!%p258_p3)  ;;  %vm655_vm2 = vcmask (!%p258_p3), 31744   ;;  %p2358_p7 = scmp.ne.s32.totalorder (!%p258_p3), %s2809_s24, 0 }
   0xb   : > { %631 = vst.msk [vmem:[#allocation2] sm:$0x3] (!%p258_p3), %vm630_vm1, %v2827_v27  ;;  %632 = vst.msk [vmem:[#allocation2 + $0x18] sm:$0x3] (!%p258_p3), %vm630_vm1, %v2827_v27 }
   0xc   : > { %2684 = vmatprep.subr.bf16.mxu0 (!%p258_p3), %v2683_v2  ;;  %633 = vst.msk [vmem:[#allocation2 + $0x30] sm:$0x3] (!%p258_p3), %vm630_vm1, %v2827_v27  ;;  %634 = vst.msk [vmem:[#allocation2 + $0x48] sm:$0x3] (!%p258_p3), %vm630_vm1, %v2827_v27 }
   0xd   : > { %2686 = vmatpush3.bf16.msra.mxu0 (!%p258_p3), %v2683_v2  ;;  %635 = vst.msk [vmem:[#allocation2 + $0x60] sm:$0x3] (!%p258_p3), %vm630_vm1, %v2827_v27  ;;  %636 = vst.msk [vmem:[#allocation2 + $0x78] sm:$0x3] (!%p258_p3), %vm630_vm1, %v2827_v27 }
   0xe   : > { %637 = vst.msk [vmem:[#allocation2 + $0x90] sm:$0x3] (!%p258_p3), %vm630_vm1, %v2827_v27  ;;  %638 = vst.msk [vmem:[#allocation2 + $0xa8] sm:$0x3] (!%p258_p3), %vm630_vm1, %v2827_v27 }
   0xf   : > { %639 = vst.msk [vmem:[#allocation2 + $0xc0] sm:$0x3] (!%p258_p3), %vm630_vm1, %v2827_v27  ;;  %640 = vst.msk [vmem:[#allocation2 + $0xd8] sm:$0x3] (!%p258_p3), %vm630_vm1, %v2827_v27 }
  0x10   : > { %s3736_s25 = smov (!%p297_p5, %s2813_s25), 1  ;;  %641 = vst.msk [vmem:[#allocation2 + $0xf0] sm:$0x3] %vm630_vm1, %v2827_v27  ;;  %642 = vst.msk [vmem:[#allocation2 + $0x108] sm:$0x3] %vm630_vm1, %v2827_v27 }
  0x11   : > { %s300_s12 = scalar_select %p299_p6, %s2809_s24, 1  ;;  %643 = vst.msk [vmem:[#allocation2 + $0x12] sm:$0x3] %vm630_vm1, %v2827_v27  ;;  %644 = vst.msk [vmem:[#allocation2 + $0x2a] sm:$0x3] %vm630_vm1, %v2827_v27 }
  0x12   : > { %s2740_s13 = smul.u32 48, %s3736_s25  ;;  %s2331_s14 = sshll.u32 %s3736_s25, 5  ;;  %645 = vst.msk [vmem:[#allocation2 + $0x42] sm:$0x3] %vm630_vm1, %v2827_v27  ;;  %646 = vst.msk [vmem:[#allocation2 + $0x5a] sm:$0x3] %vm630_vm1, %v2827_v27 }
  0x13   : > { %s2739_s15 = smul.u32 24, %s300_s12  ;;  %s2330_s16 = sshll.u32 %s300_s12, 4  ;;  %647 = vst.msk [vmem:[#allocation2 + $0x72] sm:$0x3] %vm630_vm1, %v2827_v27  ;;  %648 = vst.msk [vmem:[#allocation2 + $0x8a] sm:$0x3] %vm630_vm1, %v2827_v27 }
  0x14   : > { %s312_s17 = sadd.s32 %s2331_s14, %s2330_s16  ;;  %649 = vst.msk [vmem:[#allocation2 + $0xa2] sm:$0x3] %vm630_vm1, %v2827_v27  ;;  %650 = vst.msk [vmem:[#allocation2 + $0xba] sm:$0x3] %vm630_vm1, %v2827_v27 }
  0x15   : > { %s303_s18 = sadd.s32 %s2740_s13, %s2739_s15  ;;  %s2332_s19 = sshll.u32 %s312_s17, 3  ;;  %651 = vst.msk [vmem:[#allocation2 + $0xd2] sm:$0x3] %vm630_vm1, %v2827_v27  ;;  %652 = vst.msk [vmem:[#allocation2 + $0xea] sm:$0x3] %vm630_vm1, %v2827_v27 }
  0x16   : > { %s2329_s20 = sshll.u32 %s303_s18, 3  ;;  %s2916_s23 = scalar_lea.vmem %s3722_s7, %s2332_s19  ;;  %653 = vst.msk [vmem:[#allocation2 + $0x102] sm:$0x3] %vm630_vm1, %v2827_v27  ;;  %654 = vst.msk [vmem:[#allocation2 + $0x11a] sm:$0x3] %vm630_vm1, %v2827_v27 }
  0x17   : > { %s2921_s10 = scalar_lea.vmem %s3715_s0, %s2329_s20 }
  0x18   : > { %v315_v3 = vld [vmem:[%s2921_s10] sm:$0xff]  ;;  %v316_v4 = vld [vmem:[%s2921_s10 + $0x8] sm:$0xff]  ;;  %v317_v5 = vld [vmem:[%s2921_s10 + $0x10] sm:$0xff] }
  0x19   : > { %2537 = vmatprep.mubr.msk.f32.mxu0 %vm348_vm0, %v315_v3  ;;  %v318_v6 = vld [vmem:[%s2921_s10 + $0x18] sm:$0xff]  ;;  %v2931_v7 = vld [vmem:[%s2921_s10 + $0x20] sm:$0xff]  ;;  %v2937_v8 = vld [vmem:[%s2921_s10 + $0x28] sm:$0xff] }
  0x1a   : > { %2538 = vmatmul.mubr.msk.f32.vlgmr.msra.gmra.mrb[0].mxu0 %vm348_vm0, %v316_v4  ;;  %v2940_v9 = vld [vmem:[%s2921_s10 + $0x30] sm:$0xff]  ;;  %v2947_v10 = vld [vmem:[%s2921_s10 + $0x38] sm:$0xff]  ;;  %v2950_v11 = vld [vmem:[%s2921_s10 + $0x40] sm:$0xff] }
  0x1b   : > { %2540 = vmatprep.mubr.msk.f32.mxu0 %vm348_vm0, %v317_v5  ;;  %v2957_v12 = vld [vmem:[%s2921_s10 + $0x48] sm:$0xff]  ;;  %v2960_v13 = vld [vmem:[%s2921_s10 + $0x50] sm:$0xff]  ;;  %v2967_v14 = vld [vmem:[%s2921_s10 + $0x58] sm:$0xff] }
  0x1c   : > { %v2970_v15 = vld [vmem:[%s2921_s10 + $0x60] sm:$0xff]  ;;  %v2977_v16 = vld [vmem:[%s2921_s10 + $0x68] sm:$0xff]  ;;  %v2980_v17 = vld [vmem:[%s2921_s10 + $0x70] sm:$0xff] }
  0x1d   : > { %v2987_v18 = vld [vmem:[%s2921_s10 + $0x78] sm:$0xff]  ;;  %v2990_v19 = vld [vmem:[%s2921_s10 + $0x80] sm:$0xff]  ;;  %v2997_v20 = vld [vmem:[%s2921_s10 + $0x88] sm:$0xff] }
  0x1e   : > { %2541 = vmatmul.mubr.msk.f32.gmra.mrb[2].mxu0 %vm348_vm0, %v318_v6  ;;  %v3000_v21 = vld [vmem:[%s2921_s10 + $0x90] sm:$0xff]  ;;  %v3007_v22 = vld [vmem:[%s2921_s10 + $0x98] sm:$0xff]  ;;  %v335_v23 = vld [vmem:[%s2921_s10 + $0xa0] sm:$0xff] }
  0x1f   : > { %2543 = vmatprep.mubr.msk.f32.mxu0 %vm348_vm0, %v2931_v7  ;;  %v336_v24 = vld [vmem:[%s2921_s10 + $0xa8] sm:$0xff]  ;;  %v337_v25 = vld [vmem:[%s2921_s10 + $0xb0] sm:$0xff]  ;;  %v338_v26 = vld [vmem:[%s2921_s10 + $0xb8] sm:$0xff] }
  0x22   : > { %2544 = vmatmul.mubr.msk.f32.gmra.mrb[4].mxu0 %vm348_vm0, %v2937_v8 }
  0x23   : > { %2546 = vmatprep.mubr.msk.f32.mxu0 %vm348_vm0, %v2940_v9 }
  0x26   : > { %2547 = vmatmul.mubr.msk.f32.gmra.mrb[6].mxu0 %vm348_vm0, %v2947_v10 }
  0x27   : > { %2549 = vmatprep.mubr.msk.f32.mxu0 %vm348_vm0, %v2950_v11 }
  0x2a   : > { %2550 = vmatmul.mubr.msk.f32.gmra.mrb[8].mxu0 %vm348_vm0, %v2957_v12 }
  0x2b   : > { %2552 = vmatprep.mubr.msk.f32.mxu0 %vm348_vm0, %v2960_v13 }
  0x2e   : > { %2553 = vmatmul.mubr.msk.f32.gmra.mrb[10].mxu0 %vm348_vm0, %v2967_v14 }
  0x2f   : > { %2555 = vmatprep.mubr.msk.f32.mxu0 %vm348_vm0, %v2970_v15 }
  0x32   : > { %2556 = vmatmul.mubr.msk.f32.gmra.mrb[12].mxu0 %vm348_vm0, %v2977_v16 }
  0x33   : > { %2558 = vmatprep.mubr.msk.f32.mxu0 %vm348_vm0, %v2980_v17 }
  0x36   : > { %2559 = vmatmul.mubr.msk.f32.gmra.mrb[14].mxu0 %vm348_vm0, %v2987_v18 }
  0x37   : > { %2561 = vmatprep.mubr.msk.f32.mxu0 %vm348_vm0, %v2990_v19 }
  0x3a   : > { %2562 = vmatmul.mubr.msk.f32.gmra.mrb[16].mxu0 %vm348_vm0, %v2997_v20 }
  0x3b   : > { %2564 = vmatprep.mubr.msk.f32.mxu0 %vm348_vm0, %v3000_v21 }
  0x3e   : > { %2565 = vmatmul.mubr.msk.f32.gmra.mrb[18].mxu0 %vm348_vm0, %v3007_v22 }
  0x3f   : > { %2567 = vmatprep.mubr.msk.f32.mxu0 %vm348_vm0, %v335_v23 }
  0x42   : > { %2568 = vmatmul.mubr.msk.f32.gmra.mrb[20].mxu0 %vm348_vm0, %v336_v24 }
  0x43   : > { %2570 = vmatprep.mubr.msk.f32.mxu0 %vm348_vm0, %v337_v25 }
  0x46   : > { %2571 = vmatmul.mubr.msk.f32.gmra.mrb[22].mxu0 %vm348_vm0, %v338_v26 }
  0xed   : > { %v2539_v29 = vpop.f32.mrb[0].mxu0 }
  0xee   : > { %v493_v30 = vadd.f32 %v2539_v29, %v3046_v28  ;;  %v487_v31 = vpop.f32.mrb[1].mxu0 }
  0xef   : > { %v488_v32 = vadd.f32 %v3046_v28, %v487_v31 }
  0xf0   : > { %v607_v33 = vmax.f32 %v493_v30, 0.0 }
  0xf1   : > { %v606_v34 = vmax.f32 %v488_v32, 0.0  ;;  %v2542_v35 = vpop.f32.mrb[2].mxu0 }
  0xf2   : > { %657 = vst.msk [vmem:[#allocation2 + $0xa] sm:$0xff] %vm655_vm2, %v607_v33  ;;  %v503_v36 = vadd.f32 %v2542_v35, %v3046_v28  ;;  %v497_v37 = vpop.f32.mrb[3].mxu0 }
  0xf3   : > { %656 = vst.msk [vmem:[#allocation2 + $0x2] sm:$0xff] %vm655_vm2, %v606_v34  ;;  %v498_v38 = vadd.f32 %v3046_v28, %v497_v37 }
  0xf4   : > { %v609_v39 = vmax.f32 %v503_v36, 0.0 }
  0xf5   : > { %v608_v40 = vmax.f32 %v498_v38, 0.0  ;;  %v2545_v41 = vpop.f32.mrb[4].mxu0 }
  0xf6   : > { %659 = vst.msk [vmem:[#allocation2 + $0x22] sm:$0xff] %vm655_vm2, %v609_v39  ;;  %v513_v42 = vadd.f32 %v2545_v41, %v3046_v28  ;;  %v507_v43 = vpop.f32.mrb[5].mxu0 }
  0xf7   : > { %658 = vst.msk [vmem:[#allocation2 + $0x1a] sm:$0xff] %vm655_vm2, %v608_v40  ;;  %v508_v44 = vadd.f32 %v3046_v28, %v507_v43 }
  0xf8   : > { %v611_v45 = vmax.f32 %v513_v42, 0.0 }
  0xf9   : > { %v610_v46 = vmax.f32 %v508_v44, 0.0  ;;  %v2548_v47 = vpop.f32.mrb[6].mxu0 }
  0xfa   : > { %661 = vst.msk [vmem:[#allocation2 + $0x3a] sm:$0xff] %vm655_vm2, %v611_v45  ;;  %v523_v48 = vadd.f32 %v2548_v47, %v3046_v28  ;;  %v517_v49 = vpop.f32.mrb[7].mxu0 }
  0xfb   : > { %660 = vst.msk [vmem:[#allocation2 + $0x32] sm:$0xff] %vm655_vm2, %v610_v46  ;;  %v518_v50 = vadd.f32 %v3046_v28, %v517_v49 }
  0xfc   : > { %v613_v51 = vmax.f32 %v523_v48, 0.0 }
  0xfd   : > { %v612_v52 = vmax.f32 %v518_v50, 0.0  ;;  %v2551_v53 = vpop.f32.mrb[8].mxu0 }
  0xfe   : > { %663 = vst.msk [vmem:[#allocation2 + $0x52] sm:$0xff] %vm655_vm2, %v613_v51  ;;  %v533_v54 = vadd.f32 %v2551_v53, %v3046_v28  ;;  %v527_v55 = vpop.f32.mrb[9].mxu0 }
  0xff   : > { %662 = vst.msk [vmem:[#allocation2 + $0x4a] sm:$0xff] %vm655_vm2, %v612_v52  ;;  %v528_v56 = vadd.f32 %v3046_v28, %v527_v55 }
 0x100   : > { %v615_v57 = vmax.f32 %v533_v54, 0.0  ;;  %v2828_v54 = vmov (!%p2358_p7), 0.0  }
 0x101   : > { %v614_v58 = vmax.f32 %v528_v56, 0.0  ;;  %v2554_v59 = vpop.f32.mrb[10].mxu0  ;;  %684 = vst.msk [vmem:[#allocation2 + $0x2] sm:$0xff] (!%p2358_p7), %vm655_vm2, %v2828_v54  ;;  %685 = vst.msk [vmem:[#allocation2 + $0xa] sm:$0xff] (!%p2358_p7), %vm655_vm2, %v2828_v54 }
 0x102   : > { %665 = vst.msk [vmem:[#allocation2 + $0x6a] sm:$0xff] %vm655_vm2, %v615_v57  ;;  %v543_v60 = vadd.f32 %v2554_v59, %v3046_v28  ;;  %v537_v61 = vpop.f32.mrb[11].mxu0  ;;  %686 = vst.msk [vmem:[#allocation2 + $0x1a] sm:$0xff] (!%p2358_p7), %vm655_vm2, %v2828_v54 }
 0x103   : > { %664 = vst.msk [vmem:[#allocation2 + $0x62] sm:$0xff] %vm655_vm2, %v614_v58  ;;  %v538_v62 = vadd.f32 %v3046_v28, %v537_v61  ;;  %687 = vst.msk [vmem:[#allocation2 + $0x22] sm:$0xff] (!%p2358_p7), %vm655_vm2, %v2828_v54 }
 0x104   : > { %v617_v63 = vmax.f32 %v543_v60, 0.0 }
 0x105   : > { %v616_v0 = vmax.f32 %v538_v62, 0.0  ;;  %v2557_v1 = vpop.f32.mrb[12].mxu0 }
 0x106   : > { %667 = vst.msk [vmem:[#allocation2 + $0x82] sm:$0xff] %vm655_vm2, %v617_v63  ;;  %v553_v2 = vadd.f32 %v2557_v1, %v3046_v28  ;;  %v547_v3 = vpop.f32.mrb[13].mxu0 }
 0x107   : > { %666 = vst.msk [vmem:[#allocation2 + $0x7a] sm:$0xff] %vm655_vm2, %v616_v0  ;;  %v548_v4 = vadd.f32 %v3046_v28, %v547_v3 }
 0x108   : > { %v619_v5 = vmax.f32 %v553_v2, 0.0 }
 0x109   : > { %v618_v6 = vmax.f32 %v548_v4, 0.0  ;;  %v2560_v23 = vpop.f32.mrb[14].mxu0 }
 0x10a   : > { %669 = vst.msk [vmem:[#allocation2 + $0x9a] sm:$0xff] %vm655_vm2, %v619_v5  ;;  %v563_v24 = vadd.f32 %v2560_v23, %v3046_v28  ;;  %v557_v25 = vpop.f32.mrb[15].mxu0 }
 0x10b   : > { %668 = vst.msk [vmem:[#allocation2 + $0x92] sm:$0xff] %vm655_vm2, %v618_v6  ;;  %v558_v26 = vadd.f32 %v3046_v28, %v557_v25 }
 0x10c   : > { %v621_v27 = vmax.f32 %v563_v24, 0.0 }
 0x10d   : > { %v620_v29 = vmax.f32 %v558_v26, 0.0  ;;  %v2563_v30 = vpop.f32.mrb[16].mxu0 }
 0x10e   : > { %671 = vst.msk [vmem:[#allocation2 + $0xb2] sm:$0xff] %vm655_vm2, %v621_v27  ;;  %v573_v31 = vadd.f32 %v2563_v30, %v3046_v28  ;;  %v567_v32 = vpop.f32.mrb[17].mxu0 }
 0x10f   : > { %670 = vst.msk [vmem:[#allocation2 + $0xaa] sm:$0xff] %vm655_vm2, %v620_v29  ;;  %v568_v33 = vadd.f32 %v3046_v28, %v567_v32 }
 0x110   : > { %v623_v34 = vmax.f32 %v573_v31, 0.0 }
 0x111   : > { %v622_v35 = vmax.f32 %v568_v33, 0.0  ;;  %v2566_v36 = vpop.f32.mrb[18].mxu0 }
 0x112   : > { %673 = vst.msk [vmem:[#allocation2 + $0xca] sm:$0xff] %vm655_vm2, %v623_v34  ;;  %v583_v37 = vadd.f32 %v2566_v36, %v3046_v28  ;;  %v577_v38 = vpop.f32.mrb[19].mxu0 }
 0x113   : > { %672 = vst.msk [vmem:[#allocation2 + $0xc2] sm:$0xff] %vm655_vm2, %v622_v35  ;;  %v578_v39 = vadd.f32 %v3046_v28, %v577_v38 }
 0x114   : > { %v625_v40 = vmax.f32 %v583_v37, 0.0 }
 0x115   : > { %v624_v41 = vmax.f32 %v578_v39, 0.0  ;;  %v2569_v42 = vpop.f32.mrb[20].mxu0 }
 0x116   : > { %675 = vst.msk [vmem:[#allocation2 + $0xe2] sm:$0xff] %vm655_vm2, %v625_v40  ;;  %v593_v43 = vadd.f32 %v2569_v42, %v3046_v28  ;;  %v587_v44 = vpop.f32.mrb[21].mxu0 }
 0x117   : > { %674 = vst.msk [vmem:[#allocation2 + $0xda] sm:$0xff] %vm655_vm2, %v624_v41  ;;  %v588_v45 = vadd.f32 %v3046_v28, %v587_v44 }
 0x118   : > { %v627_v46 = vmax.f32 %v593_v43, 0.0 }
 0x119   : > { %v626_v47 = vmax.f32 %v588_v45, 0.0  ;;  %v2572_v48 = vpop.f32.mrb[22].mxu0  ;;  %683 = sbr.rel (%p2358_p7) target bundleno = 288 (0x120), region = 52 }
 0x11a   : > { %677 = vst.msk [vmem:[#allocation2 + $0xfa] sm:$0xff] %vm655_vm2, %v627_v46  ;;  %v603_v49 = vadd.f32 %v2572_v48, %v3046_v28  ;;  %v597_v50 = vpop.f32.mrb[23].mxu0 }
 0x11b   : > { %676 = vst.msk [vmem:[#allocation2 + $0xf2] sm:$0xff] %vm655_vm2, %v626_v47  ;;  %v598_v51 = vadd.f32 %v3046_v28, %v597_v50 }
 0x11c   : > { %v629_v52 = vmax.f32 %v603_v49, 0.0 }
 0x11d   : > { %v628_v53 = vmax.f32 %v598_v51, 0.0 }
 0x11e   : > { %679 = vst.msk [vmem:[#allocation2 + $0x112] sm:$0xff] %vm655_vm2, %v629_v52 }
 0x11f   : > { %678 = vst.msk [vmem:[#allocation2 + $0x10a] sm:$0xff] %vm655_vm2, %v628_v53 }
 0x120 PF: > { %p2359_p8 = scmp.ne.s32.totalorder %s2809_s24, 1 }
 0x121   : > { %v2829_v28 = vmov (!%p2359_p8), 0.0  }
 0x122   : > { %691 = sbr.rel (%p2359_p8) target bundleno = 297 (0x129), region = 56  ;;  %693 = vst.msk [vmem:[#allocation2 + $0xf2] sm:$0xff] (!%p2359_p8), %vm655_vm2, %v2829_v28  ;;  %694 = vst.msk [vmem:[#allocation2 + $0xfa] sm:$0xff] (!%p2359_p8), %vm655_vm2, %v2829_v28 }
 0x123   : > { %695 = vst.msk [vmem:[#allocation2 + $0x10a] sm:$0xff] (!%p2359_p8), %vm655_vm2, %v2829_v28  ;;  %696 = vst.msk [vmem:[#allocation2 + $0x112] sm:$0xff] (!%p2359_p8), %vm655_vm2, %v2829_v28 }
 0x129 PF: > { %v3106_v55 = vld [vmem:[#allocation2 + $0x64] sm:$0xff]  ;;  %s2830_s12 = smov 8   ;;  %s2831_s24 = smov 4   ;;  %v3114_v57 = vld [vmem:[#allocation2 + $0x6c] sm:$0xff]  ;;  %v3124_v60 = vld [vmem:[#allocation2 + $0x7a] sm:$0xff]  ;;  %vm1169_vm3 = vcmask 1043456  }
 0x12a   : > { %v3108_v56 = vld [vmem:[#allocation2 + $0x62] sm:$0xff]  ;;  %1045 = vrot.lane.b32.xlu1 %v3106_v55, %s2830_s12  ;;  %v3116_v58 = vld [vmem:[#allocation2 + $0x6a] sm:$0xff]  ;;  %v3141_v0 = vld [vmem:[#allocation2 + $0x9a] sm:$0xff]  ;;  %vm2832_vm4 = vmmov 1   ;;  %vm889_vm6 = vcmask 64512   ;;  %vm1120_vm7 = vcmask 97280  }
 0x12b   : > { %981 = vrot.lane.b32.xlu0 %v3108_v56, %s2831_s24  ;;  %v3122_v59 = vld [vmem:[#allocation2 + $0x82] sm:$0xff]  ;;  %v2360_v63 = vld [vmem:[%s3718_s3 + $0x10] sm:$0xff]  ;;  %v2361_v2 = vld [vmem:[%s3718_s3 + $0x18] sm:$0xf] }
 0x12c   : > { %v3130_v61 = vld [vmem:[#allocation2 + $0x84] sm:$0xff]  ;;  %v3132_v62 = vld [vmem:[#allocation2 + $0x7c] sm:$0xff]  ;;  %v3143_v1 = vld [vmem:[#allocation2 + $0x92] sm:$0xff]  ;;  %v2687_v3 = vpack.c.bf16 %v2361_v2, %v2360_v63 }
 0x12d   : > { %vm3149_vm5 = vmpackc.low %vm1169_vm3, %vm2832_vm4  ;;  %v3157_v5 = vld [vmem:[#allocation2 + $0x9c] sm:$0xff]  ;;  %v3159_v6 = vld [vmem:[#allocation2 + $0x94] sm:$0xff] }
 0x12e   : > { %1047 = vrot.lane.b32.xlu1 %v3114_v57, %s2830_s12  ;;  %2705 = vmatprep.subr.msk.bf16.mxu1 %vm3149_vm5, %v2687_v3  ;;  %v3173_v23 = vld [vmem:[#allocation2 + $0xb2] sm:$0xff]  ;;  %v3175_v24 = vld [vmem:[#allocation2 + $0xaa] sm:$0xff]  ;;  %v3191_v29 = vld [vmem:[#allocation2 + $0xc2] sm:$0xff] }
 0x12f   : > { %983 = vrot.lane.b32.xlu0 %v3116_v58, %s2831_s24  ;;  %2689 = vmatprep.subr.msk.bf16.mxu0 %vm3149_vm5, %v2687_v3  ;;  %v3181_v25 = vld [vmem:[#allocation2 + $0xb4] sm:$0xff]  ;;  %v3183_v26 = vld [vmem:[#allocation2 + $0xac] sm:$0xff]  ;;  %v3199_v31 = vld [vmem:[#allocation2 + $0xc4] sm:$0xff] }
 0x130   : > { %2706 = vmatpush3.bf16.msk.msra.mxu1 %vm3149_vm5, %v2687_v3  ;;  %2692 = vmatpush3.bf16.msk.msra.mxu0 %vm3149_vm5, %v2687_v3  ;;  %v3189_v27 = vld [vmem:[#allocation2 + $0xca] sm:$0xff]  ;;  %v906_v32 = vld [vmem:[%s3718_s3] sm:$0xff]  ;;  %v717_v48 = vld [vmem:[#allocation2 + $0x32] sm:$0xff] }
 0x131   : > { %v3197_v30 = vld [vmem:[#allocation2 + $0xcc] sm:$0xff]  ;;  %v907_v33 = vld [vmem:[%s3718_s3 + $0x8] sm:$0xf]  ;;  %v3215_v36 = vld [vmem:[#allocation2 + $0xda] sm:$0xff] }
 0x132   : > { %987 = vrot.lane.b32.xlu1 %v3122_v59, %s2831_s24  ;;  %v3211_v34 = vpack.c.bf16 %v907_v33, %v906_v32  ;;  %v3213_v35 = vld [vmem:[#allocation2 + $0xe2] sm:$0xff]  ;;  %v714_v39 = vld [vmem:[#allocation2 + $0xa] sm:$0xff]  ;;  %v715_v44 = vld [vmem:[#allocation2 + $0x1a] sm:$0xff] }
 0x133   : > { %985 = vrot.lane.b32.xlu0 %v3124_v60, %s2831_s24  ;;  %v3224_v37 = vld [vmem:[#allocation2 + $0xe4] sm:$0xff]  ;;  %v3226_v38 = vld [vmem:[#allocation2 + $0xdc] sm:$0xff]  ;;  %v730_v41 = vld [vmem:[#allocation2 + $0xc] sm:$0xff] }
 0x134   : > { %2695 = vmatprep.subr.msk.bf16.mxu1 %vm3149_vm5, %v3211_v34  ;;  %v713_v40 = vld [vmem:[#allocation2 + $0x2] sm:$0xff]  ;;  %v718_v47 = vld [vmem:[#allocation2 + $0x3a] sm:$0xff]  ;;  %v3244_v51 = vld [vmem:[#allocation2 + $0x52] sm:$0xff] }
 0x135   : > { %v729_v42 = vld [vmem:[#allocation2 + $0x4] sm:$0xff]  ;;  %v731_v46 = vld [vmem:[#allocation2 + $0x1c] sm:$0xff]  ;;  %v733_v50 = vld [vmem:[#allocation2 + $0x34] sm:$0xff] }
 0x136   : > { %1051 = vrot.lane.b32.xlu1 %v3130_v61, %s2830_s12  ;;  %v716_v43 = vld [vmem:[#allocation2 + $0x22] sm:$0xff]  ;;  %v719_v52 = vld [vmem:[#allocation2 + $0x4a] sm:$0xff]  ;;  %v3249_v53 = vld [vmem:[#allocation2 + $0x54] sm:$0xff] }
 0x137   : > { %1049 = vrot.lane.b32.xlu0 %v3132_v62, %s2830_s12  ;;  %v732_v45 = vld [vmem:[#allocation2 + $0x24] sm:$0xff]  ;;  %v734_v49 = vld [vmem:[#allocation2 + $0x3c] sm:$0xff]  ;;  %v3251_v54 = vld [vmem:[#allocation2 + $0x4c] sm:$0xff] }
 0x138   : > { %v3292_v28 = vld [vmem:[#allocation2 + $0x60] sm:$0xff]  ;;  %v3299_v33 = vld [vmem:[#allocation2 + $0x68] sm:$0xff] }
 0x13a   : > { %991 = vrot.lane.b32.xlu1 %v3141_v0, %s2831_s24 }
 0x13b   : > { %989 = vrot.lane.b32.xlu0 %v3143_v1, %s2831_s24 }
 0x13e   : > { %1055 = vrot.lane.b32.xlu1 %v3157_v5, %s2830_s12 }
 0x13f   : > { %1053 = vrot.lane.b32.xlu0 %v3159_v6, %s2830_s12 }
 0x142   : > { %995 = vrot.lane.b32.xlu1 %v3173_v23, %s2831_s24 }
 0x143   : > { %993 = vrot.lane.b32.xlu0 %v3175_v24, %s2831_s24 }
 0x146   : > { %1059 = vrot.lane.b32.xlu1 %v3181_v25, %s2830_s12 }
 0x147   : > { %1057 = vrot.lane.b32.xlu0 %v3183_v26, %s2830_s12 }
 0x14a   : > { %999 = vrot.lane.b32.xlu1 %v3189_v27, %s2831_s24 }
 0x14b   : > { %997 = vrot.lane.b32.xlu0 %v3191_v29, %s2831_s24 }
 0x14e   : > { %1063 = vrot.lane.b32.xlu1 %v3197_v30, %s2830_s12 }
 0x14f   : > { %1061 = vrot.lane.b32.xlu0 %v3199_v31, %s2830_s12 }
 0x152   : > { %1003 = vrot.lane.b32.xlu1 %v3213_v35, %s2831_s24 }
 0x153   : > { %1001 = vrot.lane.b32.xlu0 %v3215_v36, %s2831_s24 }
 0x156   : > { %1067 = vrot.lane.b32.xlu1 %v3224_v37, %s2830_s12 }
 0x157   : > { %1065 = vrot.lane.b32.xlu0 %v3226_v38, %s2830_s12 }
 0x15a   : > { %763 = vrot.lane.b32.xlu1 %v714_v39, %s2831_s24  ;;  %v2397_v39 = vld [vmem:[%s3718_s3 + $0x28] sm:$0xf] }
 0x15b   : > { %761 = vrot.lane.b32.xlu0 %v713_v40, %s2831_s24 }
 0x15e   : > { %827 = vrot.lane.b32.xlu1 %v730_v41, %s2830_s12 }
 0x15f   : > { %825 = vrot.lane.b32.xlu0 %v729_v42, %s2830_s12 }
 0x162   : > { %767 = vrot.lane.b32.xlu1 %v716_v43, %s2831_s24 }
 0x163   : > { %765 = vrot.lane.b32.xlu0 %v715_v44, %s2831_s24 }
 0x166   : > { %831 = vrot.lane.b32.xlu1 %v732_v45, %s2830_s12 }
 0x167   : > { %829 = vrot.lane.b32.xlu0 %v731_v46, %s2830_s12 }
 0x16a   : > { %771 = vrot.lane.b32.xlu1 %v718_v47, %s2831_s24 }
 0x16b   : > { %769 = vrot.lane.b32.xlu0 %v717_v48, %s2831_s24 }
 0x16e   : > { %835 = vrot.lane.b32.xlu1 %v734_v49, %s2830_s12 }
 0x16f   : > { %833 = vrot.lane.b32.xlu0 %v733_v50, %s2830_s12 }
 0x172   : > { %775 = vrot.lane.b32.xlu1 %v3244_v51, %s2831_s24 }
 0x173   : > { %773 = vrot.lane.b32.xlu0 %v719_v52, %s2831_s24 }
 0x176   : > { %839 = vrot.lane.b32.xlu1 %v3249_v53, %s2830_s12 }
 0x177   : > { %837 = vrot.lane.b32.xlu0 %v3251_v54, %s2830_s12 }
 0x17a   : > { %779 = vrot.lane.b32.xlu1 %v3116_v58, %s2831_s24 }
 0x17b   : > { %777 = vrot.lane.b32.xlu0 %v3108_v56, %s2831_s24 }
 0x17e   : > { %843 = vrot.lane.b32.xlu1 %v3114_v57, %s2830_s12 }
 0x17f   : > { %841 = vrot.lane.b32.xlu0 %v3106_v55, %s2830_s12 }
 0x182   : > { %783 = vrot.lane.b32.xlu1 %v3122_v59, %s2831_s24 }
 0x183   : > { %781 = vrot.lane.b32.xlu0 %v3124_v60, %s2831_s24 }
 0x186   : > { %847 = vrot.lane.b32.xlu1 %v3130_v61, %s2830_s12 }
 0x187   : > { %845 = vrot.lane.b32.xlu0 %v3132_v62, %s2830_s12 }
 0x18a   : > { %787 = vrot.lane.b32.xlu1 %v3141_v0, %s2831_s24 }
 0x18b   : > { %785 = vrot.lane.b32.xlu0 %v3143_v1, %s2831_s24 }
 0x18e   : > { %851 = vrot.lane.b32.xlu1 %v3157_v5, %s2830_s12 }
 0x18f   : > { %849 = vrot.lane.b32.xlu0 %v3159_v6, %s2830_s12 }
 0x192   : > { %791 = vrot.lane.b32.xlu1 %v3173_v23, %s2831_s24 }
 0x193   : > { %789 = vrot.lane.b32.xlu0 %v3175_v24, %s2831_s24 }
 0x196   : > { %855 = vrot.lane.b32.xlu1 %v3181_v25, %s2830_s12 }
 0x197   : > { %853 = vrot.lane.b32.xlu0 %v3183_v26, %s2830_s12 }
 0x19a   : > { %1579 = vrot.lane.b32.xlu1 %v3108_v56, %s2831_s24  ;;  %v2396_v56 = vld [vmem:[%s3718_s3 + $0x20] sm:$0xff] }
 0x19b   : > { %973 = vrot.lane.b32.xlu0 %v717_v48, %s2831_s24  ;;  %v3310_v43 = vpack.c.bf16 %v2397_v39, %v2396_v56  ;;  %v3323_v48 = vld [vmem:[#allocation2 + $0x78] sm:$0xff] }
 0x19c   : > { %v1046_v63 = vpop.permute.xlu1 %1045 }
 0x19d   : > { %v982_v2 = vpop.permute.xlu0 %981 }
 0x19e   : > { %v1089_v3 = vsel %vm655_vm2, %v3292_v28, %v982_v2  ;;  %1037 = vrot.lane.b32.xlu1 %v733_v50, %s2830_s12 }
 0x19f   : > { %975 = vrot.lane.b32.xlu0 %v718_v47, %s2831_s24  ;;  %v1105_v32 = vsel %vm889_vm6, %v1089_v3, %v1046_v63  ;;  %v3321_v47 = vld [vmem:[#allocation2 + $0x80] sm:$0xff]  ;;  %v3342_v3 = vld [vmem:[#allocation2 + $0x98] sm:$0xff] }
 0x1a0   : > { %2583 = vmatprep.mubr.msk.f32.mxu1 %vm1120_vm7, %v1105_v32  ;;  %v1048_v40 = vpop.permute.xlu1 %1047  ;;  %v3344_v32 = vld [vmem:[#allocation2 + $0x90] sm:$0xff] }
 0x1a1   : > { %v984_v41 = vpop.permute.xlu0 %983 }
 0x1a2   : > { %v1090_v42 = vsel %vm655_vm2, %v3299_v33, %v984_v41  ;;  %1643 = vrot.lane.b32.xlu1 %v3106_v55, %s2830_s12 }
 0x1a3   : > { %v1106_v44 = vsel %vm889_vm6, %v1090_v42, %v1048_v40  ;;  %1581 = vrot.lane.b32.xlu0 %v3116_v58, %s2831_s24  ;;  %v3362_v42 = vld [vmem:[#allocation2 + $0xb0] sm:$0xff] }
 0x1a4   : > { %2584 = vmatmul.mubr.msk.f32.vlgmr.msra.gmra.mrb[0].mxu1 %vm1120_vm7, %v1106_v44  ;;  %v988_v45 = vpop.permute.xlu1 %987  ;;  %v3364_v44 = vld [vmem:[#allocation2 + $0xa8] sm:$0xff] }
 0x1a5   : > { %v986_v46 = vpop.permute.xlu0 %985  ;;  %2698 = vmatpush3.bf16.msk.msra.mxu1 %vm3149_vm5, %v3211_v34  ;;  %v1092_v55 = vsel %vm655_vm2, %v3321_v47, %v988_v45 }
 0x1a6   : > { %2701 = vmatprep.subr.msk.bf16.mxu1 %vm3149_vm5, %v3310_v43  ;;  %1645 = vrot.lane.b32.xlu1 %v3114_v57, %s2830_s12  ;;  %v1091_v58 = vsel %vm655_vm2, %v3323_v48, %v986_v46 }
 0x1a7   : > { %1039 = vrot.lane.b32.xlu0 %v734_v49, %s2830_s12 }
 0x1a8   : > { %v1052_v34 = vpop.permute.xlu1 %1051 }
 0x1a9   : > { %v1050_v50 = vpop.permute.xlu0 %1049  ;;  %v1108_v63 = vsel %vm889_vm6, %v1092_v55, %v1052_v34  ;;  %v3382_v34 = vld [vmem:[#allocation2 + $0xc8] sm:$0xff] }
 0x1aa   : > { %v1107_v2 = vsel %vm889_vm6, %v1091_v58, %v1050_v50  ;;  %1583 = vrot.lane.b32.xlu1 %v3124_v60, %s2831_s24  ;;  %v3384_v50 = vld [vmem:[#allocation2 + $0xc0] sm:$0xff] }
 0x1ab   : > { %2586 = vmatprep.mubr.msk.f32.mxu1 %vm1120_vm7, %v1107_v2  ;;  %977 = vrot.lane.b32.xlu0 %v719_v52, %s2831_s24 }
 0x1ac   : > { %2587 = vmatmul.mubr.msk.f32.gmra.mrb[2].mxu1 %vm1120_vm7, %v1108_v63  ;;  %v992_v57 = vpop.permute.xlu1 %991 }
 0x1ad   : > { %v990_v49 = vpop.permute.xlu0 %989  ;;  %v1094_v56 = vsel %vm655_vm2, %v3342_v3, %v992_v57 }
 0x1ae   : > { %1041 = vrot.lane.b32.xlu1 %v3251_v54, %s2830_s12  ;;  %v1093_v60 = vsel %vm655_vm2, %v3344_v32, %v990_v49 }
 0x1af   : > { %979 = vrot.lane.b32.xlu0 %v3244_v51, %s2831_s24 }
 0x1b0   : > { %v1056_v52 = vpop.permute.xlu1 %1055 }
 0x1b1   : > { %v1054_v39 = vpop.permute.xlu0 %1053  ;;  %v1110_v40 = vsel %vm889_vm6, %v1094_v56, %v1056_v52  ;;  %v3402_v56 = vld [vmem:[#allocation2 + $0xe0] sm:$0xff] }
 0x1b2   : > { %v1109_v41 = vsel %vm889_vm6, %v1093_v60, %v1054_v39  ;;  %1647 = vrot.lane.b32.xlu1 %v3132_v62, %s2830_s12  ;;  %v3404_v60 = vld [vmem:[#allocation2 + $0xd8] sm:$0xff] }
 0x1b3   : > { %2589 = vmatprep.mubr.msk.f32.mxu1 %vm1120_vm7, %v1109_v41  ;;  %1585 = vrot.lane.b32.xlu0 %v3122_v59, %s2831_s24 }
 0x1b4   : > { %2590 = vmatmul.mubr.msk.f32.gmra.mrb[4].mxu1 %vm1120_vm7, %v1110_v40  ;;  %v996_v51 = vpop.permute.xlu1 %995 }
 0x1b5   : > { %v994_v54 = vpop.permute.xlu0 %993  ;;  %v1096_v62 = vsel %vm655_vm2, %v3362_v42, %v996_v51  ;;  %v698_v51 = vld [vmem:[#allocation2 + $0x8] sm:$0xff] }
 0x1b6   : > { %1649 = vrot.lane.b32.xlu1 %v3130_v61, %s2830_s12  ;;  %v1095_v59 = vsel %vm655_vm2, %v3364_v44, %v994_v54  ;;  %v697_v54 = vld [vmem:[#allocation2] sm:$0xff] }
 0x1b7   : > { %1043 = vrot.lane.b32.xlu0 %v3249_v53, %s2830_s12 }
 0x1b8   : > { %v1060_v45 = vpop.permute.xlu1 %1059 }
 0x1b9   : > { %v1058_v46 = vpop.permute.xlu0 %1057  ;;  %v1112_v55 = vsel %vm889_vm6, %v1096_v62, %v1060_v45 }
 0x1ba   : > { %v1111_v58 = vsel %vm889_vm6, %v1095_v59, %v1058_v46  ;;  %1589 = vrot.lane.b32.xlu1 %v3141_v0, %s2831_s24 }
 0x1bb   : > { %2592 = vmatprep.mubr.msk.f32.mxu1 %vm1120_vm7, %v1111_v58  ;;  %1587 = vrot.lane.b32.xlu0 %v3143_v1, %s2831_s24  ;;  %v699_v58 = vld [vmem:[#allocation2 + $0x18] sm:$0xff] }
 0x1bc   : > { %2593 = vmatmul.mubr.msk.f32.gmra.mrb[6].mxu1 %vm1120_vm7, %v1112_v55  ;;  %v1000_v61 = vpop.permute.xlu1 %999  ;;  %v700_v55 = vld [vmem:[#allocation2 + $0x20] sm:$0xff] }
 0x1bd   : > { %v998_v53 = vpop.permute.xlu0 %997  ;;  %v1098_v0 = vsel %vm655_vm2, %v3382_v34, %v1000_v61 }
 0x1be   : > { %1653 = vrot.lane.b32.xlu1 %v3157_v5, %s2830_s12  ;;  %v1097_v1 = vsel %vm655_vm2, %v3384_v50, %v998_v53 }
 0x1bf   : > { %1651 = vrot.lane.b32.xlu0 %v3159_v6, %s2830_s12 }
 0x1c0   : > { %v1064_v63 = vpop.permute.xlu1 %1063 }
 0x1c1   : > { %v1062_v2 = vpop.permute.xlu0 %1061  ;;  %v1114_v57 = vsel %vm889_vm6, %v1098_v0, %v1064_v63 }
 0x1c2   : > { %v1113_v49 = vsel %vm889_vm6, %v1097_v1, %v1062_v2  ;;  %1593 = vrot.lane.b32.xlu1 %v3173_v23, %s2831_s24  ;;  %v1543_v1 = vld [vmem:[#allocation2 + $0xf2] sm:$0xff] }
 0x1c3   : > { %2595 = vmatprep.mubr.msk.f32.mxu1 %vm1120_vm7, %v1113_v49  ;;  %1591 = vrot.lane.b32.xlu0 %v3175_v24, %s2831_s24  ;;  %v1559_v2 = vld [vmem:[#allocation2 + $0xf4] sm:$0xff] }
 0x1c4   : > { %2596 = vmatmul.mubr.msk.f32.gmra.mrb[8].mxu1 %vm1120_vm7, %v1114_v57  ;;  %v1004_v5 = vpop.permute.xlu1 %1003  ;;  %v3451_v57 = vld [vmem:[#allocation2 + $0x38] sm:$0xff]  ;;  %v3453_v49 = vld [vmem:[#allocation2 + $0x30] sm:$0xff] }
 0x1c5   : > { %v1002_v6 = vpop.permute.xlu0 %1001  ;;  %v1100_v23 = vsel %vm655_vm2, %v3402_v56, %v1004_v5  ;;  %v1546_v5 = vld [vmem:[#allocation2 + $0x112] sm:$0xff] }
 0x1c6   : > { %1657 = vrot.lane.b32.xlu1 %v3181_v25, %s2830_s12  ;;  %v1099_v24 = vsel %vm655_vm2, %v3404_v60, %v1002_v6 }
 0x1c7   : > { %1655 = vrot.lane.b32.xlu0 %v3183_v26, %s2830_s12 }
 0x1c8   : > { %v1068_v52 = vpop.permute.xlu1 %1067 }
 0x1c9   : > { %v1066_v39 = vpop.permute.xlu0 %1065  ;;  %v1116_v40 = vsel %vm889_vm6, %v1100_v23, %v1068_v52 }
 0x1ca   : > { %v1115_v41 = vsel %vm889_vm6, %v1099_v24, %v1066_v39  ;;  %1597 = vrot.lane.b32.xlu1 %v3189_v27, %s2831_s24  ;;  %v1545_v39 = vld [vmem:[#allocation2 + $0x10a] sm:$0xff] }
 0x1cb   : > { %2598 = vmatprep.mubr.msk.f32.mxu1 %vm1120_vm7, %v1115_v41  ;;  %1595 = vrot.lane.b32.xlu0 %v3191_v29, %s2831_s24 }
 0x1cc   : > { %2599 = vmatmul.mubr.msk.f32.gmra.mrb[10].mxu1 %vm1120_vm7, %v1116_v40  ;;  %v764_v25 = vpop.permute.xlu1 %763 }
 0x1cd   : > { %v762_v26 = vpop.permute.xlu0 %761  ;;  %v874_v62 = vsel %vm655_vm2, %v698_v51, %v764_v25  ;;  %v1562_v25 = vld [vmem:[#allocation2 + $0x114] sm:$0xff] }
 0x1ce   : > { %1661 = vrot.lane.b32.xlu1 %v3197_v30, %s2830_s12  ;;  %v873_v59 = vsel %vm655_vm2, %v697_v54, %v762_v26  ;;  %v1561_v54 = vld [vmem:[#allocation2 + $0x10c] sm:$0xff] }
 0x1cf   : > { %1659 = vrot.lane.b32.xlu0 %v3199_v31, %s2830_s12 }
 0x1d0   : > { %v828_v27 = vpop.permute.xlu1 %827 }
 0x1d1   : > { %v826_v45 = vpop.permute.xlu0 %825  ;;  %v891_v29 = vsel %vm889_vm6, %v874_v62, %v828_v27  ;;  %v3467_v62 = vld [vmem:[#allocation2 + $0x50] sm:$0xff] }
 0x1d2   : > { %v890_v46 = vsel %vm889_vm6, %v873_v59, %v826_v45  ;;  %1601 = vrot.lane.b32.xlu1 %v3213_v35, %s2831_s24  ;;  %v1544_v35 = vld [vmem:[#allocation2 + $0xfa] sm:$0xff]  ;;  %v3469_v59 = vld [vmem:[#allocation2 + $0x48] sm:$0xff] }
 0x1d3   : > { %2605 = vmatprep.mubr.msk.f32.mxu1 %vm1120_vm7, %v890_v46  ;;  %1599 = vrot.lane.b32.xlu0 %v3215_v36, %s2831_s24 }
 0x1d4   : > { %2606 = vmatmul.mubr.msk.f32.vlgmr.msra.gmra.mrb[12].mxu1 %vm1120_vm7, %v891_v29  ;;  %v768_v30 = vpop.permute.xlu1 %767 }
 0x1d5   : > { %v766_v31 = vpop.permute.xlu0 %765  ;;  %2704 = vmatpush3.bf16.msk.msra.mxu1 %vm3149_vm5, %v3310_v43  ;;  %v876_v61 = vsel %vm655_vm2, %v700_v55, %v768_v30 }
 0x1d6   : > { %1665 = vrot.lane.b32.xlu1 %v3224_v37, %s2830_s12  ;;  %v875_v36 = vsel %vm655_vm2, %v699_v58, %v766_v31  ;;  %v1560_v37 = vld [vmem:[#allocation2 + $0xfc] sm:$0xff] }
 0x1d7   : > { %1663 = vrot.lane.b32.xlu0 %v3226_v38, %s2830_s12 }
 0x1d8   : > { %v832_v53 = vpop.permute.xlu1 %831 }
 0x1d9   : > { %v830_v0 = vpop.permute.xlu0 %829  ;;  %v893_v63 = vsel %vm889_vm6, %v876_v61, %v832_v53 }
 0x1da   : > { %v892_v4 = vsel %vm889_vm6, %v875_v36, %v830_v0  ;;  %1605 = vrot.lane.b32.xlu1 %v1544_v35, %s2831_s24 }
 0x1db   : > { %2608 = vmatprep.mubr.msk.f32.mxu1 %vm1120_vm7, %v892_v4  ;;  %1603 = vrot.lane.b32.xlu0 %v1543_v1, %s2831_s24 }
 0x1dc   : > { %2609 = vmatmul.mubr.msk.f32.gmra.mrb[14].mxu1 %vm1120_vm7, %v893_v63  ;;  %v772_v38 = vpop.permute.xlu1 %771 }
 0x1dd   : > { %v770_v43 = vpop.permute.xlu0 %769  ;;  %v878_v6 = vsel %vm655_vm2, %v3451_v57, %v772_v38 }
 0x1de   : > { %1669 = vrot.lane.b32.xlu1 %v1560_v37, %s2830_s12  ;;  %v877_v23 = vsel %vm655_vm2, %v3453_v49, %v770_v43 }
 0x1df   : > { %1667 = vrot.lane.b32.xlu0 %v1559_v2, %s2830_s12 }
 0x1e0   : > { %v836_v24 = vpop.permute.xlu1 %835 }
 0x1e1   : > { %v834_v52 = vpop.permute.xlu0 %833  ;;  %v895_v40 = vsel %vm889_vm6, %v878_v6, %v836_v24 }
 0x1e2   : > { %v894_v41 = vsel %vm889_vm6, %v877_v23, %v834_v52  ;;  %1609 = vrot.lane.b32.xlu1 %v1546_v5, %s2831_s24 }
 0x1e3   : > { %2611 = vmatprep.mubr.msk.f32.mxu1 %vm1120_vm7, %v894_v41  ;;  %1607 = vrot.lane.b32.xlu0 %v1545_v39, %s2831_s24 }
 0x1e4   : > { %2612 = vmatmul.mubr.msk.f32.gmra.mrb[0].mxu1 %vm1120_vm7, %v895_v40  ;;  %v776_v26 = vpop.permute.xlu1 %775 }
 0x1e5   : > { %v774_v51 = vpop.permute.xlu0 %773  ;;  %v880_v27 = vsel %vm655_vm2, %v3467_v62, %v776_v26 }
 0x1e6   : > { %1673 = vrot.lane.b32.xlu1 %v1562_v25, %s2830_s12  ;;  %v879_v45 = vsel %vm655_vm2, %v3469_v59, %v774_v51 }
 0x1e7   : > { %1671 = vrot.lane.b32.xlu0 %v1561_v54, %s2830_s12 }
 0x1e8   : > { %v840_v29 = vpop.permute.xlu1 %839 }
 0x1e9   : > { %v838_v46 = vpop.permute.xlu0 %837  ;;  %v897_v30 = vsel %vm889_vm6, %v880_v27, %v840_v29 }
 0x1ea   : > { %v896_v31 = vsel %vm889_vm6, %v879_v45, %v838_v46 }
 0x1eb   : > { %2614 = vmatprep.mubr.msk.f32.mxu1 %vm1120_vm7, %v896_v31 }
 0x1ec   : > { %2615 = vmatmul.mubr.msk.f32.gmra.mrb[2].mxu1 %vm1120_vm7, %v897_v30  ;;  %v780_v55 = vpop.permute.xlu1 %779 }
 0x1ed   : > { %v778_v58 = vpop.permute.xlu0 %777  ;;  %v882_v35 = vsel %vm655_vm2, %v3299_v33, %v780_v55 }
 0x1ee   : > { %v881_v61 = vsel %vm655_vm2, %v3292_v28, %v778_v58 }
 0x1f0   : > { %v844_v36 = vpop.permute.xlu1 %843 }
 0x1f1   : > { %v842_v53 = vpop.permute.xlu0 %841  ;;  %v899_v0 = vsel %vm889_vm6, %v882_v35, %v844_v36 }
 0x1f2   : > { %v898_v1 = vsel %vm889_vm6, %v881_v61, %v842_v53 }
 0x1f3   : > { %2617 = vmatprep.mubr.msk.f32.mxu1 %vm1120_vm7, %v898_v1 }
 0x1f4   : > { %2618 = vmatmul.mubr.msk.f32.gmra.mrb[4].mxu1 %vm1120_vm7, %v899_v0  ;;  %v784_v63 = vpop.permute.xlu1 %783 }
 0x1f5   : > { %v782_v4 = vpop.permute.xlu0 %781  ;;  %v884_v37 = vsel %vm655_vm2, %v3321_v47, %v784_v63 }
 0x1f6   : > { %v883_v38 = vsel %vm655_vm2, %v3323_v48, %v782_v4 }
 0x1f8   : > { %v848_v43 = vpop.permute.xlu1 %847 }
 0x1f9   : > { %v846_v2 = vpop.permute.xlu0 %845  ;;  %v901_v5 = vsel %vm889_vm6, %v884_v37, %v848_v43 }
 0x1fa   : > { %v900_v6 = vsel %vm889_vm6, %v883_v38, %v846_v2 }
 0x1fb   : > { %2620 = vmatprep.mubr.msk.f32.mxu1 %vm1120_vm7, %v900_v6 }
 0x1fc   : > { %2621 = vmatmul.mubr.msk.f32.gmra.mrb[6].mxu1 %vm1120_vm7, %v901_v5  ;;  %v788_v23 = vpop.permute.xlu1 %787 }
 0x1fd   : > { %v786_v24 = vpop.permute.xlu0 %785  ;;  %v886_v52 = vsel %vm655_vm2, %v3342_v3, %v788_v23 }
 0x1fe   : > { %v885_v39 = vsel %vm655_vm2, %v3344_v32, %v786_v24 }
 0x200   : > { %v852_v40 = vpop.permute.xlu1 %851 }
 0x201   : > { %v850_v41 = vpop.permute.xlu0 %849  ;;  %v903_v25 = vsel %vm889_vm6, %v886_v52, %v852_v40 }
 0x202   : > { %v902_v26 = vsel %vm889_vm6, %v885_v39, %v850_v41 }
 0x203   : > { %2623 = vmatprep.mubr.msk.f32.mxu1 %vm1120_vm7, %v902_v26 }
 0x204   : > { %2624 = vmatmul.mubr.msk.f32.gmra.mrb[8].mxu1 %vm1120_vm7, %v903_v25  ;;  %v792_v51 = vpop.permute.xlu1 %791 }
 0x205   : > { %v790_v54 = vpop.permute.xlu0 %789  ;;  %v888_v27 = vsel %vm655_vm2, %v3362_v42, %v792_v51 }
 0x206   : > { %v887_v45 = vsel %vm655_vm2, %v3364_v44, %v790_v54 }
 0x208   : > { %v856_v29 = vpop.permute.xlu1 %855 }
 0x209   : > { %v854_v46 = vpop.permute.xlu0 %853  ;;  %v905_v30 = vsel %vm889_vm6, %v888_v27, %v856_v29 }
 0x20a   : > { %v904_v31 = vsel %vm889_vm6, %v887_v45, %v854_v46 }
 0x20b   : > { %2626 = vmatprep.mubr.msk.f32.mxu1 %vm1120_vm7, %v904_v31 }
 0x20c   : > { %2627 = vmatmul.mubr.msk.f32.gmra.mrb[10].mxu1 %vm1120_vm7, %v905_v30  ;;  %v1580_v55 = vpop.permute.xlu1 %1579 }
 0x20d   : > { %v974_v58 = vpop.permute.xlu0 %973  ;;  %v1691_v0 = vsel %vm655_vm2, %v3292_v28, %v1580_v55 }
 0x20e   : > { %v1085_v35 = vsel %vm655_vm2, %v3453_v49, %v974_v58 }
 0x210   : > { %v1038_v61 = vpop.permute.xlu1 %1037 }
 0x211   : > { %v976_v36 = vpop.permute.xlu0 %975  ;;  %v1101_v53 = vsel %vm889_vm6, %v1085_v35, %v1038_v61 }
 0x212   : > { %2577 = vmatprep.mubr.msk.f32.mxu0 %vm1120_vm7, %v1101_v53  ;;  %v1086_v37 = vsel %vm655_vm2, %v3451_v57, %v976_v36 }
 0x214   : > { %v1644_v1 = vpop.permute.xlu1 %1643 }
 0x215   : > { %v1582_v63 = vpop.permute.xlu0 %1581  ;;  %v1707_v4 = vsel %vm889_vm6, %v1691_v0, %v1644_v1 }
 0x216   : > { %2633 = vmatprep.mubr.msk.f32.mxu1 %vm1120_vm7, %v1707_v4  ;;  %v1692_v49 = vsel %vm655_vm2, %v3299_v33, %v1582_v63 }
 0x218   : > { %v1646_v38 = vpop.permute.xlu1 %1645 }
 0x219   : > { %v1040_v43 = vpop.permute.xlu0 %1039  ;;  %v1708_v2 = vsel %vm889_vm6, %v1692_v49, %v1646_v38 }
 0x21a   : > { %v1102_v5 = vsel %vm889_vm6, %v1086_v37, %v1040_v43  ;;  %2634 = vmatmul.mubr.msk.f32.vlgmr.msra.gmra.mrb[12].mxu1 %vm1120_vm7, %v1708_v2 }
 0x21b   : > { %2578 = vmatmul.mubr.msk.f32.vlgmr.msra.gmra.mrb[24].mxu0 %vm1120_vm7, %v1102_v5 }
 0x21c   : > { %v1584_v28 = vpop.permute.xlu1 %1583 }
 0x21d   : > { %v978_v6 = vpop.permute.xlu0 %977  ;;  %v1693_v33 = vsel %vm655_vm2, %v3323_v48, %v1584_v28 }
 0x21e   : > { %v1087_v23 = vsel %vm655_vm2, %v3469_v59, %v978_v6 }
 0x220   : > { %v1042_v24 = vpop.permute.xlu1 %1041 }
 0x221   : > { %v1103_v57 = vsel %vm889_vm6, %v1087_v23, %v1042_v24  ;;  %v980_v52 = vpop.permute.xlu0 %979  ;;  %v1528_v24 = vld [vmem:[#allocation2 + $0xf8] sm:$0xff] }
 0x222   : > { %2580 = vmatprep.mubr.msk.f32.mxu0 %vm1120_vm7, %v1103_v57  ;;  %v1088_v59 = vsel %vm655_vm2, %v3467_v62, %v980_v52  ;;  %v1527_v52 = vld [vmem:[#allocation2 + $0xf0] sm:$0xff] }
 0x224   : > { %v1648_v39 = vpop.permute.xlu1 %1647 }
 0x225   : > { %v1709_v40 = vsel %vm889_vm6, %v1693_v33, %v1648_v39  ;;  %v1586_v41 = vpop.permute.xlu0 %1585 }
 0x226   : > { %2636 = vmatprep.mubr.msk.f32.mxu1 %vm1120_vm7, %v1709_v40  ;;  %v1694_v25 = vsel %vm655_vm2, %v3321_v47, %v1586_v41 }
 0x228   : > { %v1650_v26 = vpop.permute.xlu1 %1649 }
 0x229   : > { %v1710_v51 = vsel %vm889_vm6, %v1694_v25, %v1650_v26  ;;  %v1044_v54 = vpop.permute.xlu0 %1043  ;;  %v1530_v26 = vld [vmem:[#allocation2 + $0x110] sm:$0xff] }
 0x22a   : > { %v1104_v27 = vsel %vm889_vm6, %v1088_v59, %v1044_v54  ;;  %2637 = vmatmul.mubr.msk.f32.gmra.mrb[14].mxu1 %vm1120_vm7, %v1710_v51  ;;  %v1529_v51 = vld [vmem:[#allocation2 + $0x108] sm:$0xff] }
 0x22b   : > { %2581 = vmatmul.mubr.msk.f32.gmra.mrb[26].mxu0 %vm1120_vm7, %v1104_v27 }
 0x22c   : > { %v1590_v48 = vpop.permute.xlu1 %1589 }
 0x22d   : > { %v1588_v45 = vpop.permute.xlu0 %1587  ;;  %v1696_v29 = vsel %vm655_vm2, %v3342_v3, %v1590_v48 }
 0x22e   : > { %v1695_v47 = vsel %vm655_vm2, %v3344_v32, %v1588_v45 }
 0x230   : > { %v1654_v46 = vpop.permute.xlu1 %1653 }
 0x231   : > { %v1712_v62 = vsel %vm889_vm6, %v1696_v29, %v1654_v46  ;;  %v1652_v30 = vpop.permute.xlu0 %1651 }
 0x232   : > { %v1711_v31 = vsel %vm889_vm6, %v1695_v47, %v1652_v30  ;;  %v1977_v47 = vld [vmem:[%s3720_s5] sm:$0xf] }
 0x233   : > { %2639 = vmatprep.mubr.msk.f32.mxu1 %vm1120_vm7, %v1711_v31  ;;  %2657 = vmatprep.subr.msk.mxu0 %vm1169_vm3, %v1977_v47  ;;  %v3597_v31 = vld [vmem:[%s3719_s4] ss:$0 sm:$0xff] }
 0x234   : > { %2640 = vmatmul.mubr.msk.f32.gmra.mrb[0].mxu1 %vm1120_vm7, %v1712_v62  ;;  %v1594_v55 = vpop.permute.xlu1 %1593  ;;  %2658 = vmatpush3.msk.msra.mxu0 %vm1169_vm3, %v1977_v47 }
 0x235   : > { %v1592_v58 = vpop.permute.xlu0 %1591  ;;  %v1698_v35 = vsel %vm655_vm2, %v3362_v42, %v1594_v55 }
 0x236   : > { %v1697_v3 = vsel %vm655_vm2, %v3364_v44, %v1592_v58 }
 0x238   : > { %v1658_v61 = vpop.permute.xlu1 %1657 }
 0x239   : > { %v1714_v32 = vsel %vm889_vm6, %v1698_v35, %v1658_v61  ;;  %v1656_v36 = vpop.permute.xlu0 %1655 }
 0x23a   : > { %v1713_v53 = vsel %vm889_vm6, %v1697_v3, %v1656_v36 }
 0x23b   : > { %2642 = vmatprep.mubr.msk.f32.mxu1 %vm1120_vm7, %v1713_v53 }
 0x23c   : > { %2643 = vmatmul.mubr.msk.f32.gmra.mrb[2].mxu1 %vm1120_vm7, %v1714_v32  ;;  %v1598_v0 = vpop.permute.xlu1 %1597 }
 0x23d   : > { %v1596_v1 = vpop.permute.xlu0 %1595  ;;  %v1700_v63 = vsel %vm655_vm2, %v3382_v34, %v1598_v0 }
 0x23e   : > { %v1699_v42 = vsel %vm655_vm2, %v3384_v50, %v1596_v1 }
 0x240   : > { %v1662_v4 = vpop.permute.xlu1 %1661 }
 0x241   : > { %v1716_v44 = vsel %vm889_vm6, %v1700_v63, %v1662_v4  ;;  %v1660_v37 = vpop.permute.xlu0 %1659 }
 0x242   : > { %v1715_v49 = vsel %vm889_vm6, %v1699_v42, %v1660_v37 }
 0x243   : > { %2645 = vmatprep.mubr.msk.f32.mxu1 %vm1120_vm7, %v1715_v49 }
 0x244   : > { %2646 = vmatmul.mubr.msk.f32.gmra.mrb[4].mxu1 %vm1120_vm7, %v1716_v44  ;;  %v1602_v38 = vpop.permute.xlu1 %1601 }
 0x245   : > { %v1600_v43 = vpop.permute.xlu0 %1599  ;;  %v1702_v2 = vsel %vm655_vm2, %v3402_v56, %v1602_v38 }
 0x246   : > { %v1701_v34 = vsel %vm655_vm2, %v3404_v60, %v1600_v43 }
 0x248   : > { %v1666_v5 = vpop.permute.xlu1 %1665 }
 0x249   : > { %v1718_v50 = vsel %vm889_vm6, %v1702_v2, %v1666_v5  ;;  %v1664_v28 = vpop.permute.xlu0 %1663 }
 0x24a   : > { %v1717_v6 = vsel %vm889_vm6, %v1701_v34, %v1664_v28 }
 0x24b   : > { %2648 = vmatprep.mubr.msk.f32.mxu1 %vm1120_vm7, %v1717_v6 }
 0x24c   : > { %2649 = vmatmul.mubr.msk.f32.gmra.mrb[6].mxu1 %vm1120_vm7, %v1718_v50  ;;  %v1606_v23 = vpop.permute.xlu1 %1605 }
 0x24d   : > { %v1604_v57 = vpop.permute.xlu0 %1603  ;;  %v1704_v33 = vsel %vm655_vm2, %v1528_v24, %v1606_v23 }
 0x24e   : > { %v1703_v39 = vsel %vm655_vm2, %v1527_v52, %v1604_v57 }
 0x250   : > { %v1670_v56 = vpop.permute.xlu1 %1669 }
 0x251   : > { %v1720_v60 = vsel %vm889_vm6, %v1704_v33, %v1670_v56  ;;  %v1668_v40 = vpop.permute.xlu0 %1667 }
 0x252   : > { %v1719_v41 = vsel %vm889_vm6, %v1703_v39, %v1668_v40 }
 0x253   : > { %2651 = vmatprep.mubr.msk.f32.mxu1 %vm1120_vm7, %v1719_v41 }
 0x254   : > { %2652 = vmatmul.mubr.msk.f32.gmra.mrb[8].mxu1 %vm1120_vm7, %v1720_v60  ;;  %v1610_v25 = vpop.permute.xlu1 %1609 }
 0x255   : > { %v1608_v59 = vpop.permute.xlu0 %1607  ;;  %v1706_v54 = vsel %vm655_vm2, %v1530_v26, %v1610_v25 }
 0x256   : > { %v1705_v48 = vsel %vm655_vm2, %v1529_v51, %v1608_v59 }
 0x258   : > { %v1674_v27 = vpop.permute.xlu1 %1673 }
 0x259   : > { %v1722_v45 = vsel %vm889_vm6, %v1706_v54, %v1674_v27  ;;  %v1672_v29 = vpop.permute.xlu0 %1671 }
 0x25a   : > { %v1721_v46 = vsel %vm889_vm6, %v1705_v48, %v1672_v29 }
 0x25b   : > { %2654 = vmatprep.mubr.msk.f32.mxu1 %vm1120_vm7, %v1721_v46 }
 0x25c   : > { %2655 = vmatmul.mubr.msk.f32.gmra.mrb[10].mxu1 %vm1120_vm7, %v1722_v45 }
 0x2ed   : > { %v2635_v30 = vpop.f32.mrb[12].mxu1 }
 0x2ee   : > { %v2579_v62 = vpop.f32.mrb[24].mxu0  ;;  %v1843_v35 = vpop.f32.mrb[13].mxu1 }
 0x2ef   : > { %v2707_v55 = vadd.f32 %v2635_v30, %v2579_v62  ;;  %v1239_v58 = vpop.f32.mrb[25].mxu0 }
 0x2f0   : > { %v2708_v61 = vadd.f32 %v1843_v35, %v1239_v58 }
 0x2f1   : > { %v1946_v3 = vadd.f32 %v2707_v55, %v3597_v31 }
 0x2f2   : > { %v1945_v32 = vadd.f32 %v2708_v61, %v3597_v31 }
 0x2f3   : > { %v1962_v53 = vmax.f32 %v1946_v3, 0.0 }
 0x2f4   : > { %v1961_v36 = vmax.f32 %v1945_v32, 0.0 }
 0x2f6   : > { %2659 = vmatprep.mubr.msk.f32.mxu0 %vm655_vm2, %v1961_v36 }
 0x2f7   : > { %2660 = vmatmul.mubr.msk.f32.vlgmr.msra.gmra.mrb[28].mxu0 %vm655_vm2, %v1962_v53  ;;  %v3634_v53 = vld [vmem:[%s3721_s6] ss:$0 sm:$0xff] }
 0x2fd   : > { %v2638_v0 = vpop.f32.mrb[14].mxu1 }
 0x2fe   : > { %v2582_v1 = vpop.f32.mrb[26].mxu0  ;;  %v1853_v63 = vpop.f32.mrb[15].mxu1 }
 0x2ff   : > { %v2709_v4 = vadd.f32 %v2638_v0, %v2582_v1  ;;  %v1249_v42 = vpop.f32.mrb[27].mxu0 }
 0x300   : > { %v2710_v44 = vadd.f32 %v1853_v63, %v1249_v42 }
 0x301   : > { %v1948_v37 = vadd.f32 %v2709_v4, %v3597_v31 }
 0x302   : > { %v1947_v49 = vadd.f32 %v2710_v44, %v3597_v31 }
 0x303   : > { %v1964_v43 = vmax.f32 %v1948_v37, 0.0 }
 0x304   : > { %v1963_v38 = vmax.f32 %v1947_v49, 0.0 }
 0x306   : > { %2662 = vmatprep.mubr.msk.f32.mxu0 %vm655_vm2, %v1963_v38 }
 0x307   : > { %v2641_v2 = vpop.f32.mrb[0].mxu1  ;;  %2663 = vmatmul.mubr.msk.f32.gmra.mrb[30].mxu0 %vm655_vm2, %v1964_v43 }
 0x308   : > { %v1950_v5 = vadd.f32 %v2641_v2, %v3597_v31  ;;  %v1863_v34 = vpop.f32.mrb[1].mxu1 }
 0x309   : > { %v1949_v50 = vadd.f32 %v3597_v31, %v1863_v34 }
 0x30a   : > { %v1966_v6 = vmax.f32 %v1950_v5, 0.0 }
 0x30b   : > { %v1965_v28 = vmax.f32 %v1949_v50, 0.0 }
 0x30d   : > { %2665 = vmatprep.mubr.msk.f32.mxu0 %vm655_vm2, %v1965_v28 }
 0x30e   : > { %2666 = vmatmul.mubr.msk.f32.gmra.mrb[32].mxu0 %vm655_vm2, %v1966_v6 }
 0x30f   : > { %v2644_v23 = vpop.f32.mrb[2].mxu1 }
 0x310   : > { %v1952_v24 = vadd.f32 %v2644_v23, %v3597_v31  ;;  %v1873_v57 = vpop.f32.mrb[3].mxu1 }
 0x311   : > { %v1951_v52 = vadd.f32 %v3597_v31, %v1873_v57 }
 0x312   : > { %v1968_v56 = vmax.f32 %v1952_v24, 0.0 }
 0x313   : > { %v1967_v33 = vmax.f32 %v1951_v52, 0.0 }
 0x315   : > { %2668 = vmatprep.mubr.msk.f32.mxu0 %vm655_vm2, %v1967_v33 }
 0x316   : > { %2669 = vmatmul.mubr.msk.f32.gmra.mrb[34].mxu0 %vm655_vm2, %v1968_v56 }
 0x317   : > { %v2647_v39 = vpop.f32.mrb[4].mxu1 }
 0x318   : > { %v1954_v60 = vadd.f32 %v2647_v39, %v3597_v31  ;;  %v1883_v40 = vpop.f32.mrb[5].mxu1 }
 0x319   : > { %v1953_v41 = vadd.f32 %v3597_v31, %v1883_v40 }
 0x31a   : > { %v1970_v26 = vmax.f32 %v1954_v60, 0.0 }
 0x31b   : > { %v1969_v25 = vmax.f32 %v1953_v41, 0.0 }
 0x31d   : > { %2671 = vmatprep.mubr.msk.f32.mxu0 %vm655_vm2, %v1969_v25 }
 0x31e   : > { %2672 = vmatmul.mubr.msk.f32.gmra.mrb[36].mxu0 %vm655_vm2, %v1970_v26 }
 0x31f   : > { %v2650_v59 = vpop.f32.mrb[6].mxu1 }
 0x320   : > { %v1956_v51 = vadd.f32 %v2650_v59, %v3597_v31  ;;  %v1893_v54 = vpop.f32.mrb[7].mxu1 }
 0x321   : > { %v1955_v27 = vadd.f32 %v3597_v31, %v1893_v54 }
 0x322   : > { %v1972_v45 = vmax.f32 %v1956_v51, 0.0 }
 0x323   : > { %v1971_v48 = vmax.f32 %v1955_v27, 0.0 }
 0x325   : > { %2674 = vmatprep.mubr.msk.f32.mxu0 %vm655_vm2, %v1971_v48 }
 0x326   : > { %2675 = vmatmul.mubr.msk.f32.gmra.mrb[38].mxu0 %vm655_vm2, %v1972_v45 }
 0x327   : > { %v2653_v29 = vpop.f32.mrb[8].mxu1 }
 0x328   : > { %v1958_v46 = vadd.f32 %v2653_v29, %v3597_v31  ;;  %v1903_v47 = vpop.f32.mrb[9].mxu1 }
 0x329   : > { %v1957_v62 = vadd.f32 %v3597_v31, %v1903_v47 }
 0x32a   : > { %v1974_v55 = vmax.f32 %v1958_v46, 0.0 }
 0x32b   : > { %v1973_v30 = vmax.f32 %v1957_v62, 0.0 }
 0x32d   : > { %2677 = vmatprep.mubr.msk.f32.mxu0 %vm655_vm2, %v1973_v30 }
 0x32e   : > { %2678 = vmatmul.mubr.msk.f32.gmra.mrb[40].mxu0 %vm655_vm2, %v1974_v55 }
 0x32f   : > { %v2656_v58 = vpop.f32.mrb[10].mxu1 }
 0x330   : > { %v1960_v35 = vadd.f32 %v2656_v58, %v3597_v31  ;;  %v1913_v61 = vpop.f32.mrb[11].mxu1 }
 0x331   : > { %v1959_v3 = vadd.f32 %v3597_v31, %v1913_v61 }
 0x332   : > { %v1976_v36 = vmax.f32 %v1960_v35, 0.0 }
 0x333   : > { %v1975_v32 = vmax.f32 %v1959_v3, 0.0 }
 0x335   : > { %2680 = vmatprep.mubr.msk.f32.mxu0 %vm655_vm2, %v1975_v32 }
 0x336   : > { %2681 = vmatmul.mubr.msk.f32.gmra.mrb[42].mxu0 %vm655_vm2, %v1976_v36 }
 0x3ca   : > { %v2661_v0 = vpop.f32.mrb[28].mxu0 }
 0x3cb   : > { %v2108_v1 = vadd.f32 %v2661_v0, %v3634_v53  ;;  %v2102_v63 = vpop.f32.mrb[29].mxu0 }
 0x3cc   : > { %v2103_v4 = vadd.f32 %v3634_v53, %v2102_v63 }
 0x3cd   : > { %v2182_v31 = vadd.f32 %v2108_v1, %v2937_v8 }
 0x3ce   : > { %v2181_v42 = vadd.f32 %v2103_v4, %v2931_v7 }
 0x3cf   : > { %v2198_v44 = vmax.f32 %v2182_v31, 0.0 }
 0x3d0   : > { %v2197_v37 = vmax.f32 %v2181_v42, 0.0 }
 0x3d1   : > { %2214 = vst.msk [vmem:[%s2916_s23 + $0x8] sm:$0xff] %vm348_vm0, %v2198_v44 }
 0x3d2   : > { %2213 = vst.msk [vmem:[%s2916_s23] sm:$0xff] %vm348_vm0, %v2197_v37 }
 0x3da   : > { %v2664_v49 = vpop.f32.mrb[30].mxu0 }
 0x3db   : > { %v2118_v38 = vadd.f32 %v2664_v49, %v3634_v53  ;;  %v2112_v43 = vpop.f32.mrb[31].mxu0 }
 0x3dc   : > { %v2113_v2 = vadd.f32 %v3634_v53, %v2112_v43 }
 0x3dd   : > { %v2184_v5 = vadd.f32 %v2118_v38, %v2947_v10 }
 0x3de   : > { %v2183_v8 = vadd.f32 %v2113_v2, %v2940_v9 }
 0x3df   : > { %v2200_v34 = vmax.f32 %v2184_v5, 0.0 }
 0x3e0   : > { %v2199_v7 = vmax.f32 %v2183_v8, 0.0 }
 0x3e1   : > { %2216 = vst.msk [vmem:[%s2916_s23 + $0x18] sm:$0xff] %vm348_vm0, %v2200_v34  ;;  %v2667_v50 = vpop.f32.mrb[32].mxu0 }
 0x3e2   : > { %2215 = vst.msk [vmem:[%s2916_s23 + $0x10] sm:$0xff] %vm348_vm0, %v2199_v7  ;;  %v2128_v28 = vadd.f32 %v2667_v50, %v3634_v53  ;;  %v2122_v6 = vpop.f32.mrb[33].mxu0 }
 0x3e3   : > { %v2123_v23 = vadd.f32 %v3634_v53, %v2122_v6 }
 0x3e4   : > { %v2186_v24 = vadd.f32 %v2128_v28, %v2957_v12 }
 0x3e5   : > { %v2185_v10 = vadd.f32 %v2123_v23, %v2950_v11 }
 0x3e6   : > { %v2202_v57 = vmax.f32 %v2186_v24, 0.0 }
 0x3e7   : > { %v2201_v9 = vmax.f32 %v2185_v10, 0.0 }
 0x3e8   : > { %2218 = vst.msk [vmem:[%s2916_s23 + $0x28] sm:$0xff] %vm348_vm0, %v2202_v57 }
 0x3e9   : > { %2217 = vst.msk [vmem:[%s2916_s23 + $0x20] sm:$0xff] %vm348_vm0, %v2201_v9  ;;  %v2670_v52 = vpop.f32.mrb[34].mxu0 }
 0x3ea   : > { %v2138_v33 = vadd.f32 %v2670_v52, %v3634_v53  ;;  %v2132_v56 = vpop.f32.mrb[35].mxu0 }
 0x3eb   : > { %v2133_v39 = vadd.f32 %v3634_v53, %v2132_v56 }
 0x3ec   : > { %v2188_v60 = vadd.f32 %v2138_v33, %v2967_v14 }
 0x3ed   : > { %v2187_v12 = vadd.f32 %v2133_v39, %v2960_v13 }
 0x3ee   : > { %v2204_v40 = vmax.f32 %v2188_v60, 0.0 }
 0x3ef   : > { %v2203_v11 = vmax.f32 %v2187_v12, 0.0 }
 0x3f0   : > { %2220 = vst.msk [vmem:[%s2916_s23 + $0x38] sm:$0xff] %vm348_vm0, %v2204_v40 }
 0x3f1   : > { %2219 = vst.msk [vmem:[%s2916_s23 + $0x30] sm:$0xff] %vm348_vm0, %v2203_v11  ;;  %v2673_v41 = vpop.f32.mrb[36].mxu0 }
 0x3f2   : > { %v2148_v25 = vadd.f32 %v2673_v41, %v3634_v53  ;;  %v2142_v26 = vpop.f32.mrb[37].mxu0 }
 0x3f3   : > { %v2143_v59 = vadd.f32 %v3634_v53, %v2142_v26 }
 0x3f4   : > { %v2190_v51 = vadd.f32 %v2148_v25, %v2977_v16 }
 0x3f5   : > { %v2189_v14 = vadd.f32 %v2143_v59, %v2970_v15 }
 0x3f6   : > { %v2206_v54 = vmax.f32 %v2190_v51, 0.0 }
 0x3f7   : > { %v2205_v13 = vmax.f32 %v2189_v14, 0.0 }
 0x3f8   : > { %2222 = vst.msk [vmem:[%s2916_s23 + $0x48] sm:$0xff] %vm348_vm0, %v2206_v54 }
 0x3f9   : > { %2221 = vst.msk [vmem:[%s2916_s23 + $0x40] sm:$0xff] %vm348_vm0, %v2205_v13  ;;  %v2676_v27 = vpop.f32.mrb[38].mxu0 }
 0x3fa   : > { %v2158_v48 = vadd.f32 %v2676_v27, %v3634_v53  ;;  %v2152_v45 = vpop.f32.mrb[39].mxu0 }
 0x3fb   : > { %v2153_v29 = vadd.f32 %v3634_v53, %v2152_v45 }
 0x3fc   : > { %v2192_v46 = vadd.f32 %v2158_v48, %v2987_v18 }
 0x3fd   : > { %v2191_v16 = vadd.f32 %v2153_v29, %v2980_v17 }
 0x3fe   : > { %v2208_v47 = vmax.f32 %v2192_v46, 0.0 }
 0x3ff   : > { %v2207_v15 = vmax.f32 %v2191_v16, 0.0 }
 0x400   : > { %2224 = vst.msk [vmem:[%s2916_s23 + $0x58] sm:$0xff] %vm348_vm0, %v2208_v47 }
 0x401   : > { %2223 = vst.msk [vmem:[%s2916_s23 + $0x50] sm:$0xff] %vm348_vm0, %v2207_v15  ;;  %v2679_v62 = vpop.f32.mrb[40].mxu0 }
 0x402   : > { %v2168_v30 = vadd.f32 %v2679_v62, %v3634_v53  ;;  %v2162_v55 = vpop.f32.mrb[41].mxu0 }
 0x403   : > { %v2163_v58 = vadd.f32 %v3634_v53, %v2162_v55 }
 0x404   : > { %v2194_v35 = vadd.f32 %v2168_v30, %v2997_v20 }
 0x405   : > { %v2193_v18 = vadd.f32 %v2163_v58, %v2990_v19 }
 0x406   : > { %v2210_v61 = vmax.f32 %v2194_v35, 0.0 }
 0x407   : > { %v2209_v17 = vmax.f32 %v2193_v18, 0.0 }
 0x408   : > { %2226 = vst.msk [vmem:[%s2916_s23 + $0x68] sm:$0xff] %vm348_vm0, %v2210_v61 }
 0x409   : > { %2225 = vst.msk [vmem:[%s2916_s23 + $0x60] sm:$0xff] %vm348_vm0, %v2209_v17  ;;  %v2682_v3 = vpop.f32.mrb[42].mxu0 }
 0x40a   : > { %v2178_v32 = vadd.f32 %v2682_v3, %v3634_v53  ;;  %v2172_v36 = vpop.f32.mrb[43].mxu0 }
 0x40b   : > { %v2173_v0 = vadd.f32 %v3634_v53, %v2172_v36 }
 0x40c   : > { %v2196_v1 = vadd.f32 %v2178_v32, %v3007_v22 }
 0x40d   : > { %v2195_v63 = vadd.f32 %v2173_v0, %v3000_v21 }
 0x40e   : > { %v2212_v4 = vmax.f32 %v2196_v1, 0.0 }
 0x40f   : > { %v2211_v20 = vmax.f32 %v2195_v63, 0.0 }
 0x410   : > { %2228 = vst.msk [vmem:[%s2916_s23 + $0x78] sm:$0xff] %vm348_vm0, %v2212_v4 }
 0x411   : > { %2227 = vst.msk [vmem:[%s2916_s23 + $0x70] sm:$0xff] %vm348_vm0, %v2211_v20 }
 0x412 PF: > { %s17_s28 = sadd.s32 1, %s2825_s28   ;;  %s3725_s24 = smov %s2817_s26 }
 0x413   : > { %p14_p9 = scmp.ge.s32.totalorder %s17_s28, 6   ;;  %s3726_s25 = smov %s2821_s27 }
 0x414   : > { %s3727_s26 = smov %s3730_s29  ;;  %s3728_s27 = smov %s3734_s30 }
 0x415   :  { %16 = sbr.rel (!%p14_p9) target bundleno = 3 (0x3), region = 91 }

</bundles_post_ra>
